<compile_context>
chip_gen: v7x
topology: tpu7x:2x2x1
jax: 0.10.0
libtpu: 0.0.40
codegen_flags: <defaults>
</compile_context>

<pallas_src>
import jax
import jax.numpy as jnp
import numpy as np
from jax import lax
from jax.experimental import pallas as pl
from jax.experimental.pallas import tpu as pltpu


# ----------------------------------------------------------------------------
# Fused kernel: one image per grid step.
# ----------------------------------------------------------------------------
def fused_stem_kernel(x_ref, w_ref, bias_ref, cmask_ref, out_ref, rhs_ref):
    # x_ref:     (1, 16*Cin, L)       bf16  4x4 space-to-depth input, (row, col) flat on lanes
    # w_ref:     (4*Cout, K)          bf16  parity-expanded conv weights, BN scale folded in
    # bias_ref:  (4*Cout, 1)          f32   folded conv-bias + BN shift
    # cmask_ref: (1, Npix)            f32   0.0 on pooled-col==0 lanes, else 1.0
    # out_ref:   (1, Cout, Po_h, Po_w) f32  pooled output (NCHW block)
    # rhs_ref:   (K, Npix)            bf16  scratch: in-VMEM im2col
    _, cout, po_h, po_w = out_ref.shape
    kc = x_ref.shape[1]                  # 16*Cin  (channels per block tap)
    npix = rhs_ref.shape[1]              # (Po_h + 1) * Q
    q = po_w + 2                         # lane pitch of one pooled row (2 junk pad cols)

    # ---- build the im2col RHS in VMEM: 9 shifted windows of the flat s2d plane ----
    for a in range(3):                   # row-block tap
        for c in range(3):               # col-block tap
            off = a * q + c
            rhs_ref[(a * 3 + c) * kc:(a * 3 + c + 1) * kc, :] = x_ref[0, :, off:off + npix]

    # ---- conv as ONE transposed MXU matmul: pixels occupy the output lanes ----
    acc = jnp.dot(w_ref[...], rhs_ref[...], preferred_element_type=jnp.float32)
    y = jnp.maximum(acc + bias_ref[...], 0.0)        # (4*Cout, Npix)  conv+BN+ReLU, f32

    # parity groups (sublane-aligned slices of Cout rows each):
    #   ee: conv rows 2p,   cols 2q      eo: rows 2p,   cols 2q+1
    #   oe: conv rows 2p+1, cols 2q      oo: rows 2p+1, cols 2q+1
    y_ee = y[0 * cout:1 * cout]
    y_eo = y[1 * cout:2 * cout]
    y_oe = y[2 * cout:3 * cout]
    y_oo = y[3 * cout:4 * cout]

    cm = cmask_ref[...]                  # kills the "col 2q-1" term at pooled-col 0

    def shift_right(v):                  # dest[:, j] = v[:, j-1]; j==0 lanes masked by cm
        return jnp.concatenate([jnp.zeros((cout, 1), jnp.float32), v[:, :-1]], axis=1)

    # 3-wide max along pooled columns (post-ReLU => replacing -inf pad by 0 is exact)
    even_rows = jnp.maximum(y_ee, jnp.maximum(y_eo, shift_right(y_eo) * cm))
    odd_rows = jnp.maximum(y_oe, jnp.maximum(y_oo, shift_right(y_oo) * cm))

    # first computed row (lanes [0, Q)) is conv row -1 == the pool's top padding:
    # zero its odd-row contribution (exact, everything >= 0).
    lane = lax.broadcasted_iota(jnp.int32, (1, npix), 1)
    odd_rows = jnp.where(lane >= q, odd_rows, 0.0)

    # 3-wide max along pooled rows: pooled p = max(even[p], odd[p], odd[p-1]);
    # in the flattened layout these are in-bounds lane slices at offsets Q, Q and 0.
    n_out = po_h * q
    pooled = jnp.maximum(
        jnp.maximum(even_rows[:, q:q + n_out], odd_rows[:, q:q + n_out]),
        odd_rows[:, 0:n_out])

    # drop the 2 junk pad columns per row while storing (output is NCHW directly)
    for p in range(po_h):
        out_ref[0, :, p, :] = pooled[:, p * q:p * q + po_w]


# ----------------------------------------------------------------------------
# Wrapper: 4x4 space-to-depth, BN folding, parity-expanded weights, pallas_call.
# ----------------------------------------------------------------------------
def first_conv_forward(x_nchw, conv_w_hwio, conv_b, gamma, beta, run_mean, run_var,
                       eps=1e-5, compute_dtype=jnp.bfloat16):
    N, Cin, H, W = x_nchw.shape
    KH, KW, _, Cout = conv_w_hwio.shape
    assert (KH, KW) == (7, 7), "stem kernel is specialized to the 7x7/s2/p3 conv"
    # conv k=7,s=2,p=3 -> Ho=H/2 ; pool k=3,s=2,p=1 -> Po=Ho/2.
    # TODO(synk): general (odd) spatial sizes would need explicit edge handling.
    assert H % 4 == 0 and W % 4 == 0, "fused stem expects H, W divisible by 4"
    Ho, Wo = H // 2, W // 2
    Po_h, Po_w = Ho // 2, Wo // 2
    Q = Po_w + 2                       # padded pooled-row pitch on the lane axis
    H4 = Po_h + 3                      # space-to-depth row blocks (incl. padding blocks)
    Npix = (Po_h + 1) * Q              # pixels computed per image (1 extra top row)
    KC = 16 * Cin                      # s2d channels per (row, col) block tap
    K = 9 * KC                         # contraction depth (3 x 3 block taps)

    # ---- fold conv bias + BatchNorm (inference, running stats) ----
    inv_std = lax.rsqrt(run_var.astype(jnp.float32) + eps)
    scale = (gamma * inv_std).astype(jnp.float32)                            # (Cout,)
    bias = (beta + (conv_b - run_mean) * gamma * inv_std).astype(jnp.float32)

    # ---- parity-expanded weights ----
    # conv output (row 2p+pr, col 2q+pc) reads input (4p + 2pr + kh - 3, 4q + 2pc + kw - 3);
    # with zero padding (top 9, left 5) that lands in s2d block (p + 1 + a, q + c) at
    # sub-position (sh4, sw4) with kh = 4a + sh4 - 2pr - 2, kw = 4c + sw4 - 2pc - 2.
    wpad = jnp.zeros((16, 16, Cin, Cout), jnp.float32)
    wpad = wpad.at[4:11, 4:11].set(conv_w_hwio.astype(jnp.float32))
    groups = []
    for pr in range(2):
        for pc in range(2):
            taps = []
            for a in range(3):
                for c in range(3):
                    r0 = 4 * a - 2 * pr + 2
                    c0 = 4 * c - 2 * pc + 2
                    win = wpad[r0:r0 + 4, c0:c0 + 4]            # (4, 4, Cin, Cout)
                    taps.append(win.reshape(16 * Cin, Cout))
            groups.append(jnp.concatenate(taps, axis=0).T)      # (Cout, K)
    w4 = jnp.concatenate(groups, axis=0)                        # (4*Cout, K)
    w4 = (w4 * jnp.tile(scale, 4)[:, None]).astype(compute_dtype)   # fold BN scale
    bias4 = jnp.tile(bias, 4).reshape(4 * Cout, 1)

    # ---- 4x4 space-to-depth of the zero-padded input (≈ input-sized, channels-first,
    #      flattened (row, col) so the kernel's lane axis is the pixel axis) ----
    xpad = jnp.pad(x_nchw.astype(compute_dtype), ((0, 0), (0, 0), (9, 3), (5, 3)))
    x4 = xpad.reshape(N, Cin, H4, 4, Q, 4)
    x4 = x4.transpose(0, 3, 5, 1, 2, 4).reshape(N, KC, H4 * Q)  # channel = (sh4, sw4, cin)
    L = ((H4 * Q + 2 + 127) // 128) * 128                       # room for shifted windows
    x4 = jnp.pad(x4, ((0, 0), (0, 0), (0, L - H4 * Q)))

    # mask that removes the "pooled col - 1" contribution at the left edge of every row
    cmask = (jnp.arange(Npix) % Q != 0).astype(jnp.float32).reshape(1, Npix)

    # rough per-step VMEM budget (im2col scratch dominates); whole image per grid step.
    est = (K * Npix * 2 + 2 * KC * L * 2 + 6 * (4 * Cout) * Npix * 4
           + 2 * Cout * Po_h * Po_w * 4 + (4 * Cout) * K * 2)
    cparams = dict(dimension_semantics=("parallel",))
    if 2 * est > 16 * 1024 * 1024:
        cparams["vmem_limit_bytes"] = int(min(64 * 1024 * 1024, 2 * est))

    out = pl.pallas_call(
        fused_stem_kernel,
        out_shape=jax.ShapeDtypeStruct((N, Cout, Po_h, Po_w), jnp.float32),
        grid=(N,),
        in_specs=[
            pl.BlockSpec((1, KC, L), lambda n: (n, 0, 0)),        # whole s2d image
            pl.BlockSpec((4 * Cout, K), lambda n: (0, 0)),        # weights: VMEM resident
            pl.BlockSpec((4 * Cout, 1), lambda n: (0, 0)),        # folded bias
            pl.BlockSpec((1, Npix), lambda n: (0, 0)),            # left-edge column mask
        ],
        out_specs=pl.BlockSpec((1, Cout, Po_h, Po_w), lambda n: (n, 0, 0, 0)),
        scratch_shapes=[pltpu.VMEM((K, Npix), compute_dtype)],
        compiler_params=pltpu.CompilerParams(**cparams),
    )(x4, w4, bias4, cmask)
    return out                                    # NCHW, matching the PyTorch module


# ----------------------------------------------------------------------------
# Pure-JAX f32 reference (same math, no Pallas) for a sanity check.
# ----------------------------------------------------------------------------
def first_conv_reference(x_nchw, conv_w_hwio, conv_b, gamma, beta, run_mean, run_var,
                         eps=1e-5):
    x_nhwc = jnp.transpose(x_nchw, (0, 2, 3, 1)).astype(jnp.float32)
    y = lax.conv_general_dilated(
        x_nhwc, conv_w_hwio.astype(jnp.float32),
        window_strides=(2, 2), padding=((3, 3), (3, 3)),
        dimension_numbers=("NHWC", "HWIO", "NHWC"),
        precision=lax.Precision.HIGHEST)
    y = y + conv_b.reshape(1, 1, 1, -1)
    inv_std = 1.0 / jnp.sqrt(run_var + eps)
    y = (y - run_mean) * (gamma * inv_std) + beta
    y = jnp.maximum(y, 0.0)
    z = lax.reduce_window(
        y, -jnp.inf, lax.max,
        window_dimensions=(1, 3, 3, 1), window_strides=(1, 2, 2, 1),
        padding=((0, 0), (1, 1), (1, 1), (0, 0)))
    return jnp.transpose(z, (0, 3, 1, 2))


if __name__ == "__main__":
    # Module defaults: inplanes=3, planes=16.  Small test: batch=2, 16x16 spatial.
    N, Cin, H, W = 2, 3, 16, 16
    Cout, KH, KW = 16, 7, 7

    key = jax.random.PRNGKey(0)
    k = jax.random.split(key, 7)
    x = jax.random.normal(k[0], (N, Cin, H, W), jnp.float32)                  # NCHW input
    conv_w = 0.1 * jax.random.normal(k[1], (KH, KW, Cin, Cout), jnp.float32)  # HWIO
    conv_b = 0.1 * jax.random.normal(k[2], (Cout,), jnp.float32)
    gamma = 1.0 + 0.1 * jax.random.normal(k[3], (Cout,), jnp.float32)
    beta = 0.1 * jax.random.normal(k[4], (Cout,), jnp.float32)
    run_mean = 0.05 * jax.random.normal(k[5], (Cout,), jnp.float32)
    run_var = 1.0 + 0.1 * jnp.abs(jax.random.normal(k[6], (Cout,), jnp.float32))

    fwd = jax.jit(first_conv_forward)
    out = jax.block_until_ready(fwd(x, conv_w, conv_b, gamma, beta, run_mean, run_var))

    ref = first_conv_reference(x, conv_w, conv_b, gamma, beta, run_mean, run_var)
    # bf16 matmul operands vs. f32 reference -> slightly loose tolerance.
    np.testing.assert_allclose(np.asarray(out), np.asarray(ref), rtol=2e-2, atol=5e-2)
    assert out.shape == (N, Cout, 4, 4), out.shape

    print("KERNEL_OK")
</pallas_src>

<mosaic_0001>
module attributes {stable_mosaic.version = 11 : i64} {
  func.func @fused_stem_kernel(%arg0: i32, %arg1: memref<1x48x128xbf16, #tpu.memory_space<vmem>>, %arg2: memref<64x432xbf16, #tpu.memory_space<vmem>>, %arg3: memref<64x1xf32, #tpu.memory_space<vmem>>, %arg4: memref<1x30xf32, #tpu.memory_space<vmem>>, %arg5: memref<1x16x4x4xf32, #tpu.memory_space<vmem>>, %arg6: memref<432x30xbf16, #tpu.memory_space<vmem>>) attributes {dimension_semantics = [#tpu.dimension_semantics<parallel>], iteration_bounds = array<i64: 2>, scalar_prefetch = 0 : i64, scratch_operands = 1 : i64, tpu.core_type = #tpu.core_type<tc>, window_params = [{transform_indices = @transform_0, window_bounds = array<i64: 1, 48, 128>}, {pipeline_mode = #tpu.pipeline_mode<synchronous>, transform_indices = @transform_1, window_bounds = array<i64: 64, 432>}, {pipeline_mode = #tpu.pipeline_mode<synchronous>, transform_indices = @transform_2, window_bounds = array<i64: 64, 1>}, {pipeline_mode = #tpu.pipeline_mode<synchronous>, transform_indices = @transform_3, window_bounds = array<i64: 1, 30>}, {transform_indices = @transform_4, window_bounds = array<i64: 1, 16, 4, 4>}]} {
    %c0 = arith.constant 0 : index
    %c0_0 = arith.constant 0 : index
    %c0_1 = arith.constant 0 : index
    %0 = vector.load %arg1[%c0, %c0_0, %c0_1] : memref<1x48x128xbf16, #tpu.memory_space<vmem>>, vector<1x48x30xbf16>
    %1 = vector.shape_cast %0 : vector<1x48x30xbf16> to vector<48x30xbf16>
    %c0_2 = arith.constant 0 : index
    %c0_3 = arith.constant 0 : index
    %2 = vector.load %arg6[%c0_2, %c0_3] : memref<432x30xbf16, #tpu.memory_space<vmem>>, vector<48x30xbf16>
    tpu.vector_store %arg6[%c0_2, %c0_3], %1 {strides = array<i32>} : memref<432x30xbf16, #tpu.memory_space<vmem>>, vector<48x30xbf16>,
    %c0_4 = arith.constant 0 : index
    %c0_5 = arith.constant 0 : index
    %c1 = arith.constant 1 : index
    %3 = vector.load %arg1[%c0_4, %c0_5, %c1] : memref<1x48x128xbf16, #tpu.memory_space<vmem>>, vector<1x48x30xbf16>
    %4 = vector.shape_cast %3 : vector<1x48x30xbf16> to vector<48x30xbf16>
    %c48 = arith.constant 48 : index
    %c0_6 = arith.constant 0 : index
    %5 = vector.load %arg6[%c48, %c0_6] : memref<432x30xbf16, #tpu.memory_space<vmem>>, vector<48x30xbf16>
    tpu.vector_store %arg6[%c48, %c0_6], %4 {strides = array<i32>} : memref<432x30xbf16, #tpu.memory_space<vmem>>, vector<48x30xbf16>,
    %c0_7 = arith.constant 0 : index
    %c0_8 = arith.constant 0 : index
    %c2 = arith.constant 2 : index
    %6 = vector.load %arg1[%c0_7, %c0_8, %c2] : memref<1x48x128xbf16, #tpu.memory_space<vmem>>, vector<1x48x30xbf16>
    %7 = vector.shape_cast %6 : vector<1x48x30xbf16> to vector<48x30xbf16>
    %c96 = arith.constant 96 : index
    %c0_9 = arith.constant 0 : index
    %8 = vector.load %arg6[%c96, %c0_9] : memref<432x30xbf16, #tpu.memory_space<vmem>>, vector<48x30xbf16>
    tpu.vector_store %arg6[%c96, %c0_9], %7 {strides = array<i32>} : memref<432x30xbf16, #tpu.memory_space<vmem>>, vector<48x30xbf16>,
    %c0_10 = arith.constant 0 : index
    %c0_11 = arith.constant 0 : index
    %c6 = arith.constant 6 : index
    %9 = vector.load %arg1[%c0_10, %c0_11, %c6] : memref<1x48x128xbf16, #tpu.memory_space<vmem>>, vector<1x48x30xbf16>
    %10 = vector.shape_cast %9 : vector<1x48x30xbf16> to vector<48x30xbf16>
    %c144 = arith.constant 144 : index
    %c0_12 = arith.constant 0 : index
    %11 = vector.load %arg6[%c144, %c0_12] : memref<432x30xbf16, #tpu.memory_space<vmem>>, vector<48x30xbf16>
    tpu.vector_store %arg6[%c144, %c0_12], %10 {strides = array<i32>} : memref<432x30xbf16, #tpu.memory_space<vmem>>, vector<48x30xbf16>,
    %c0_13 = arith.constant 0 : index
    %c0_14 = arith.constant 0 : index
    %c7 = arith.constant 7 : index
    %12 = vector.load %arg1[%c0_13, %c0_14, %c7] : memref<1x48x128xbf16, #tpu.memory_space<vmem>>, vector<1x48x30xbf16>
    %13 = vector.shape_cast %12 : vector<1x48x30xbf16> to vector<48x30xbf16>
    %c192 = arith.constant 192 : index
    %c0_15 = arith.constant 0 : index
    %14 = vector.load %arg6[%c192, %c0_15] : memref<432x30xbf16, #tpu.memory_space<vmem>>, vector<48x30xbf16>
    tpu.vector_store %arg6[%c192, %c0_15], %13 {strides = array<i32>} : memref<432x30xbf16, #tpu.memory_space<vmem>>, vector<48x30xbf16>,
    %c0_16 = arith.constant 0 : index
    %c0_17 = arith.constant 0 : index
    %c8 = arith.constant 8 : index
    %15 = vector.load %arg1[%c0_16, %c0_17, %c8] : memref<1x48x128xbf16, #tpu.memory_space<vmem>>, vector<1x48x30xbf16>
    %16 = vector.shape_cast %15 : vector<1x48x30xbf16> to vector<48x30xbf16>
    %c240 = arith.constant 240 : index
    %c0_18 = arith.constant 0 : index
    %17 = vector.load %arg6[%c240, %c0_18] : memref<432x30xbf16, #tpu.memory_space<vmem>>, vector<48x30xbf16>
    tpu.vector_store %arg6[%c240, %c0_18], %16 {strides = array<i32>} : memref<432x30xbf16, #tpu.memory_space<vmem>>, vector<48x30xbf16>,
    %c0_19 = arith.constant 0 : index
    %c0_20 = arith.constant 0 : index
    %c12 = arith.constant 12 : index
    %18 = vector.load %arg1[%c0_19, %c0_20, %c12] : memref<1x48x128xbf16, #tpu.memory_space<vmem>>, vector<1x48x30xbf16>
    %19 = vector.shape_cast %18 : vector<1x48x30xbf16> to vector<48x30xbf16>
    %c288 = arith.constant 288 : index
    %c0_21 = arith.constant 0 : index
    %20 = vector.load %arg6[%c288, %c0_21] : memref<432x30xbf16, #tpu.memory_space<vmem>>, vector<48x30xbf16>
    tpu.vector_store %arg6[%c288, %c0_21], %19 {strides = array<i32>} : memref<432x30xbf16, #tpu.memory_space<vmem>>, vector<48x30xbf16>,
    %c0_22 = arith.constant 0 : index
    %c0_23 = arith.constant 0 : index
    %c13 = arith.constant 13 : index
    %21 = vector.load %arg1[%c0_22, %c0_23, %c13] : memref<1x48x128xbf16, #tpu.memory_space<vmem>>, vector<1x48x30xbf16>
    %22 = vector.shape_cast %21 : vector<1x48x30xbf16> to vector<48x30xbf16>
    %c336 = arith.constant 336 : index
    %c0_24 = arith.constant 0 : index
    %23 = vector.load %arg6[%c336, %c0_24] : memref<432x30xbf16, #tpu.memory_space<vmem>>, vector<48x30xbf16>
    tpu.vector_store %arg6[%c336, %c0_24], %22 {strides = array<i32>} : memref<432x30xbf16, #tpu.memory_space<vmem>>, vector<48x30xbf16>,
    %c0_25 = arith.constant 0 : index
    %c0_26 = arith.constant 0 : index
    %c14 = arith.constant 14 : index
    %24 = vector.load %arg1[%c0_25, %c0_26, %c14] : memref<1x48x128xbf16, #tpu.memory_space<vmem>>, vector<1x48x30xbf16>
    %25 = vector.shape_cast %24 : vector<1x48x30xbf16> to vector<48x30xbf16>
    %c384 = arith.constant 384 : index
    %c0_27 = arith.constant 0 : index
    %26 = vector.load %arg6[%c384, %c0_27] : memref<432x30xbf16, #tpu.memory_space<vmem>>, vector<48x30xbf16>
    tpu.vector_store %arg6[%c384, %c0_27], %25 {strides = array<i32>} : memref<432x30xbf16, #tpu.memory_space<vmem>>, vector<48x30xbf16>,
    %c0_28 = arith.constant 0 : index
    %c0_29 = arith.constant 0 : index
    %27 = vector.load %arg2[%c0_28, %c0_29] : memref<64x432xbf16, #tpu.memory_space<vmem>>, vector<64x432xbf16>
    %c0_30 = arith.constant 0 : index
    %c0_31 = arith.constant 0 : index
    %28 = vector.load %arg6[%c0_30, %c0_31] : memref<432x30xbf16, #tpu.memory_space<vmem>>, vector<432x30xbf16>
    %cst = arith.constant dense<0.000000e+00> : vector<64x30xf32>
    %29 = tpu.matmul %27, %28, %cst {dimension_numbers = #tpu.dot_dimension_numbers<[1], [0], [0], [1], [0, 0, 1, 1], [], []>} : vector<64x432xbf16>, vector<432x30xbf16>, vector<64x30xf32> -> vector<64x30xf32>
    %c0_32 = arith.constant 0 : index
    %c0_33 = arith.constant 0 : index
    %30 = vector.load %arg3[%c0_32, %c0_33] : memref<64x1xf32, #tpu.memory_space<vmem>>, vector<64x1xf32>
    %31 = vector.broadcast %30 : vector<64x1xf32> to vector<64x30xf32>
    %32 = arith.addf %29, %31 : vector<64x30xf32>
    %cst_34 = arith.constant 0.000000e+00 : f32
    %33 = vector.broadcast %cst_34 : f32 to vector<64x30xf32>
    %34 = arith.maximumf %32, %33 : vector<64x30xf32>
    %35 = vector.extract_strided_slice %34 {offsets = [0, 0], sizes = [16, 30], strides = [1, 1]} : vector<64x30xf32> to vector<16x30xf32>
    %36 = vector.extract_strided_slice %34 {offsets = [16, 0], sizes = [16, 30], strides = [1, 1]} : vector<64x30xf32> to vector<16x30xf32>
    %37 = vector.extract_strided_slice %34 {offsets = [32, 0], sizes = [16, 30], strides = [1, 1]} : vector<64x30xf32> to vector<16x30xf32>
    %38 = vector.extract_strided_slice %34 {offsets = [48, 0], sizes = [16, 30], strides = [1, 1]} : vector<64x30xf32> to vector<16x30xf32>
    %c0_35 = arith.constant 0 : index
    %c0_36 = arith.constant 0 : index
    %39 = vector.load %arg4[%c0_35, %c0_36] : memref<1x30xf32, #tpu.memory_space<vmem>>, vector<1x30xf32>
    %cst_37 = arith.constant 0.000000e+00 : f32
    %40 = vector.broadcast %cst_37 : f32 to vector<16x1xf32>
    %41 = vector.extract_strided_slice %36 {offsets = [0, 0], sizes = [16, 29], strides = [1, 1]} : vector<16x30xf32> to vector<16x29xf32>
    %42 = tpu.concatenate %40, %41 in 1 : vector<16x1xf32>, vector<16x29xf32> -> vector<16x30xf32>
    %43 = vector.broadcast %39 : vector<1x30xf32> to vector<16x30xf32>
    %44 = arith.mulf %42, %43 : vector<16x30xf32>
    %45 = arith.maximumf %36, %44 : vector<16x30xf32>
    %46 = arith.maximumf %35, %45 : vector<16x30xf32>
    %cst_38 = arith.constant 0.000000e+00 : f32
    %47 = vector.broadcast %cst_38 : f32 to vector<16x1xf32>
    %48 = vector.extract_strided_slice %38 {offsets = [0, 0], sizes = [16, 29], strides = [1, 1]} : vector<16x30xf32> to vector<16x29xf32>
    %49 = tpu.concatenate %47, %48 in 1 : vector<16x1xf32>, vector<16x29xf32> -> vector<16x30xf32>
    %50 = vector.broadcast %39 : vector<1x30xf32> to vector<16x30xf32>
    %51 = arith.mulf %49, %50 : vector<16x30xf32>
    %52 = arith.maximumf %38, %51 : vector<16x30xf32>
    %53 = arith.maximumf %37, %52 : vector<16x30xf32>
    %54 = tpu.iota {dimensions = array<i32: 1>} : vector<1x30xi32>
    %c6_i32 = arith.constant 6 : i32
    %55 = vector.broadcast %c6_i32 : i32 to vector<1x30xi32>
    %56 = arith.cmpi sge, %54, %55 : vector<1x30xi32>
    %cst_39 = arith.constant 0.000000e+00 : f32
    %57 = vector.shape_cast %56 : vector<1x30xi1> to vector<1x30xi1>
    %58 = vector.broadcast %57 : vector<1x30xi1> to vector<16x30xi1>
    %59 = vector.broadcast %cst_39 : f32 to vector<16x30xf32>
    %60 = arith.select %58, %53, %59 : vector<16x30xi1>, vector<16x30xf32>
    %61 = vector.extract_strided_slice %46 {offsets = [0, 6], sizes = [16, 24], strides = [1, 1]} : vector<16x30xf32> to vector<16x24xf32>
    %62 = vector.extract_strided_slice %60 {offsets = [0, 6], sizes = [16, 24], strides = [1, 1]} : vector<16x30xf32> to vector<16x24xf32>
    %63 = arith.maximumf %61, %62 : vector<16x24xf32>
    %64 = vector.extract_strided_slice %60 {offsets = [0, 0], sizes = [16, 24], strides = [1, 1]} : vector<16x30xf32> to vector<16x24xf32>
    %65 = arith.maximumf %63, %64 : vector<16x24xf32>
    %66 = vector.extract_strided_slice %65 {offsets = [0, 0], sizes = [16, 4], strides = [1, 1]} : vector<16x24xf32> to vector<16x4xf32>
    %c0_40 = arith.constant 0 : index
    %c0_41 = arith.constant 0 : index
    %c0_42 = arith.constant 0 : index
    %c0_43 = arith.constant 0 : index
    %67 = vector.load %arg5[%c0_40, %c0_41, %c0_42, %c0_43] : memref<1x16x4x4xf32, #tpu.memory_space<vmem>>, vector<1x16x1x4xf32>
    %68 = vector.shape_cast %67 : vector<1x16x1x4xf32> to vector<16x4xf32>
    %69 = vector.shape_cast %66 : vector<16x4xf32> to vector<1x16x1x4xf32>
    tpu.vector_store %arg5[%c0_40, %c0_41, %c0_42, %c0_43], %69 {strides = array<i32>} : memref<1x16x4x4xf32, #tpu.memory_space<vmem>>, vector<1x16x1x4xf32>,
    %70 = vector.extract_strided_slice %65 {offsets = [0, 6], sizes = [16, 4], strides = [1, 1]} : vector<16x24xf32> to vector<16x4xf32>
    %c0_44 = arith.constant 0 : index
    %c0_45 = arith.constant 0 : index
    %c1_46 = arith.constant 1 : index
    %c0_47 = arith.constant 0 : index
    %71 = vector.load %arg5[%c0_44, %c0_45, %c1_46, %c0_47] : memref<1x16x4x4xf32, #tpu.memory_space<vmem>>, vector<1x16x1x4xf32>
    %72 = vector.shape_cast %71 : vector<1x16x1x4xf32> to vector<16x4xf32>
    %73 = vector.shape_cast %70 : vector<16x4xf32> to vector<1x16x1x4xf32>
    tpu.vector_store %arg5[%c0_44, %c0_45, %c1_46, %c0_47], %73 {strides = array<i32>} : memref<1x16x4x4xf32, #tpu.memory_space<vmem>>, vector<1x16x1x4xf32>,
    %74 = vector.extract_strided_slice %65 {offsets = [0, 12], sizes = [16, 4], strides = [1, 1]} : vector<16x24xf32> to vector<16x4xf32>
    %c0_48 = arith.constant 0 : index
    %c0_49 = arith.constant 0 : index
    %c2_50 = arith.constant 2 : index
    %c0_51 = arith.constant 0 : index
    %75 = vector.load %arg5[%c0_48, %c0_49, %c2_50, %c0_51] : memref<1x16x4x4xf32, #tpu.memory_space<vmem>>, vector<1x16x1x4xf32>
    %76 = vector.shape_cast %75 : vector<1x16x1x4xf32> to vector<16x4xf32>
    %77 = vector.shape_cast %74 : vector<16x4xf32> to vector<1x16x1x4xf32>
    tpu.vector_store %arg5[%c0_48, %c0_49, %c2_50, %c0_51], %77 {strides = array<i32>} : memref<1x16x4x4xf32, #tpu.memory_space<vmem>>, vector<1x16x1x4xf32>,
    %78 = vector.extract_strided_slice %65 {offsets = [0, 18], sizes = [16, 4], strides = [1, 1]} : vector<16x24xf32> to vector<16x4xf32>
    %c0_52 = arith.constant 0 : index
    %c0_53 = arith.constant 0 : index
    %c3 = arith.constant 3 : index
    %c0_54 = arith.constant 0 : index
    %79 = vector.load %arg5[%c0_52, %c0_53, %c3, %c0_54] : memref<1x16x4x4xf32, #tpu.memory_space<vmem>>, vector<1x16x1x4xf32>
    %80 = vector.shape_cast %79 : vector<1x16x1x4xf32> to vector<16x4xf32>
    %81 = vector.shape_cast %78 : vector<16x4xf32> to vector<1x16x1x4xf32>
    tpu.vector_store %arg5[%c0_52, %c0_53, %c3, %c0_54], %81 {strides = array<i32>} : memref<1x16x4x4xf32, #tpu.memory_space<vmem>>, vector<1x16x1x4xf32>,
    return
  }
  func.func @transform_0(%arg0: i32) -> (i32, i32, i32) {
    %c0_i32 = arith.constant 0 : i32
    %c0_i32_0 = arith.constant 0 : i32
    %c0_i32_1 = arith.constant 0 : i32
    return %arg0, %c0_i32, %c0_i32_0 : i32, i32, i32
  }
  func.func @transform_1(%arg0: i32) -> (i32, i32) {
    %c0_i32 = arith.constant 0 : i32
    %c0_i32_0 = arith.constant 0 : i32
    %c0_i32_1 = arith.constant 0 : i32
    return %c0_i32, %c0_i32_0 : i32, i32
  }
  func.func @transform_2(%arg0: i32) -> (i32, i32) {
    %c0_i32 = arith.constant 0 : i32
    %c0_i32_0 = arith.constant 0 : i32
    %c0_i32_1 = arith.constant 0 : i32
    return %c0_i32, %c0_i32_0 : i32, i32
  }
  func.func @transform_3(%arg0: i32) -> (i32, i32) {
    %c0_i32 = arith.constant 0 : i32
    %c0_i32_0 = arith.constant 0 : i32
    %c0_i32_1 = arith.constant 0 : i32
    return %c0_i32, %c0_i32_0 : i32, i32
  }
  func.func @transform_4(%arg0: i32) -> (i32, i32, i32, i32) {
    %c0_i32 = arith.constant 0 : i32
    %c0_i32_0 = arith.constant 0 : i32
    %c0_i32_1 = arith.constant 0 : i32
    %c0_i32_2 = arith.constant 0 : i32
    return %arg0, %c0_i32, %c0_i32_0, %c0_i32_1 : i32, i32, i32, i32
  }
}

</mosaic_0001>

<bundles_post_ra>
// kernel: tile.13
= control target key start
LH: loop header
LB: loop body
LE: loop exit
PB: predicated region body
PF: predicated region fallthrough
CT: control target
= control target key end

     0   :  { %s22_s0 = inlined_call_operand.vmem [shape: f32[16], index: 0, kind: input, shape index: {}]   ;;  %s23_s1 = inlined_call_operand.vmem [shape: f32[4,16], index: 1, kind: output, shape index: {}]  }
   0x1   :  { %v4_v0 = vld [vmem:[%s22_s0] ss:$0 sm:$0xff] }
   0x2   :  { %5 = vst [vmem:[%s23_s1] sm:$0xf] %v4_v0 }

// kernel: mul.11
= control target key start
LH: loop header
LB: loop body
LE: loop exit
PB: predicated region body
PF: predicated region fallthrough
CT: control target
= control target key end

     0   :  { %vm7_vm0 = vcmask 130048   ;;  %s37_s8 = smov 16   ;;  %s38_s9 = smov 32   ;;  %vm13_vm1 = vcmask 523648   ;;  %vm19_vm2 = vcmask 392448   ;;  %vm25_vm3 = vcmask 261248   ;;  %s55_s0 = inlined_call_operand.vmem [shape: f32[4,16], index: 0, kind: input, shape index: {}]   ;;  %s56_s1 = inlined_call_operand.vmem [shape: f32[64], index: 1, kind: output, shape index: {}]  }
   0x1   :  { %v4_v0 = vld [vmem:[%s55_s0] sm:$0xf]  ;;  %s36_s0 = smov 48  }
   0x2   :  { %5 = vst [vmem:[#allocation1] sm:$0xf] %v4_v0 }
   0x9   :  { %v10_v1 = vld [vmem:[#allocation1 + $0x3] sm:$0x1]   ;;  %v22_v2 = vld [vmem:[#allocation1 + $0x1] sm:$0x1]   ;;  %v6_v3 = vld [vmem:[#allocation1] sm:$0x1]  }
   0xa   :  { %11 = vrot.lane.b32.xlu0 %v10_v1, %s36_s0  ;;  %23 = vrot.lane.b32.xlu1 %v22_v2, %s37_s8  ;;  %v16_v4 = vld [vmem:[#allocation1 + $0x2] sm:$0x1]   ;;  %8 = vst.msk [vmem:[#allocation0] sm:$0x1] %vm7_vm0, %v6_v3  }
   0xe   :  { %17 = vrot.lane.b32.xlu0 %v16_v4, %s38_s9 }
  0x7c   :  { %v12_v5 = vpop.permute.xlu0 %11   ;;  %v24_v6 = vpop.permute.xlu1 %23  }
  0x7d   :  { %14 = vst.msk [vmem:[#allocation0] sm:$0x1] %vm13_vm1, %v12_v5  }
  0x80   :  { %v18_v7 = vpop.permute.xlu0 %17  }
  0x81   :  { %20 = vst.msk [vmem:[#allocation0] sm:$0x1] %vm19_vm2, %v18_v7  }
  0x82   :  { %26 = vst.msk [vmem:[#allocation0] sm:$0x1] %vm25_vm3, %v24_v6  }
  0x89   :  { %v30_v8 = vld [vmem:[#allocation0] sm:$0x1] }
  0x8a   :  { %32 = vst [vmem:[%s56_s1] sm:$0x1] %v30_v8 }

// kernel: tile.0
= control target key start
LH: loop header
LB: loop body
LE: loop exit
PB: predicated region body
PF: predicated region fallthrough
CT: control target
= control target key end

     0   :  { %s176_s8 = smov 125   ;;  %s177_s9 = smov 126   ;;  %vm7_vm0 = vcmask 7168   ;;  %s331_s0 = inlined_call_operand.vmem [shape: f32[4,16], index: 0, kind: input, shape index: {}]   ;;  %s332_s1 = inlined_call_operand.vmem [shape: f32[64,1], index: 1, kind: output, shape index: {}]  }
   0x1   :  { %v4_v0 = vld [vmem:[%s331_s0] sm:$0xf]  ;;  %s175_s0 = smov 127   ;;  %s178_s10 = smov 124  }
   0x2   :  { %5 = vst [vmem:[#allocation0] sm:$0xf] %v4_v0  ;;  %s179_s11 = smov 123   ;;  %s180_s12 = smov 122  }
   0x3   :  { %s181_s13 = smov 121   ;;  %s182_s14 = smov 120  }
   0x4   :  { %s183_s19 = smov 119   ;;  %s184_s20 = smov 118  }
   0x5   :  { %s185_s21 = smov 117   ;;  %s186_s22 = smov 116  }
   0x6   :  { %s187_s23 = smov 115   ;;  %s188_s24 = smov 114  }
   0x7   :  { %s189_s25 = smov 113  }
   0x9   :  { %v10_v1 = vld [vmem:[#allocation0] sm:$0xf]  }
   0xa   :  { %v26_v2 = vld [vmem:[#allocation0] sm:$0xf]   ;;  %11 = vrot.lane.b32.xlu0 %v10_v1, %s175_s0 }
   0xb   :  { %27 = vrot.lane.b32.xlu1 %v26_v2, %s176_s8  ;;  %v18_v3 = vld [vmem:[#allocation0] sm:$0xf]  }
   0xc   :  { %v34_v4 = vld [vmem:[#allocation0] sm:$0xf]  }
   0xd   :  { %v42_v5 = vld [vmem:[#allocation0] sm:$0xf]  }
   0xe   :  { %19 = vrot.lane.b32.xlu0 %v18_v3, %s177_s9  ;;  %v50_v6 = vld [vmem:[#allocation0] sm:$0xf]  }
   0xf   :  { %35 = vrot.lane.b32.xlu1 %v34_v4, %s178_s10  ;;  %v58_v7 = vld [vmem:[#allocation0] sm:$0xf]  }
  0x10   :  { %v66_v8 = vld [vmem:[#allocation0] sm:$0xf]  }
  0x11   :  { %v74_v9 = vld [vmem:[#allocation0] sm:$0xf]  }
  0x12   :  { %43 = vrot.lane.b32.xlu0 %v42_v5, %s179_s11  ;;  %v82_v10 = vld [vmem:[#allocation0] sm:$0xf]  }
  0x13   :  { %51 = vrot.lane.b32.xlu1 %v50_v6, %s180_s12  ;;  %v6_v11 = vld [vmem:[#allocation0] sm:$0xf]  }
  0x14   :  { %8 = vst.msk [vmem:[%s332_s1] ss:$16 sm:$0x3] %vm7_vm0, %v6_v11   ;;  %9 = vst.msk [vmem:[%s332_s1] ss:$16 sm:$0xc] %vm7_vm0, %v6_v11  }
  0x15   :  { %v90_v12 = vld [vmem:[#allocation0] sm:$0xf]  }
  0x16   :  { %59 = vrot.lane.b32.xlu0 %v58_v7, %s181_s13  ;;  %v98_v13 = vld [vmem:[#allocation0] sm:$0xf]  }
  0x17   :  { %67 = vrot.lane.b32.xlu1 %v66_v8, %s182_s14  ;;  %v106_v14 = vld [vmem:[#allocation0] sm:$0xf]  }
  0x18   :  { %v114_v15 = vld [vmem:[#allocation0] sm:$0xf]  }
  0x19   :  { %v122_v16 = vld [vmem:[#allocation0] sm:$0xf]  }
  0x1a   :  { %75 = vrot.lane.b32.xlu0 %v74_v9, %s183_s19 }
  0x1b   :  { %83 = vrot.lane.b32.xlu1 %v82_v10, %s184_s20 }
  0x1e   :  { %91 = vrot.lane.b32.xlu0 %v90_v12, %s185_s21 }
  0x1f   :  { %99 = vrot.lane.b32.xlu1 %v98_v13, %s186_s22 }
  0x22   :  { %107 = vrot.lane.b32.xlu0 %v106_v14, %s187_s23 }
  0x23   :  { %115 = vrot.lane.b32.xlu1 %v114_v15, %s188_s24 }
  0x26   :  { %123 = vrot.lane.b32.xlu0 %v122_v16, %s189_s25 }
  0x7c   :  { %v12_v17 = vpop.permute.xlu0 %11  }
  0x7d   :  { %v28_v18 = vpop.permute.xlu1 %27   ;;  %130 = vst.msk [vmem:[%s332_s1 + $0x1] ss:$16 sm:$0x3] %vm7_vm0, %v12_v17   ;;  %131 = vst.msk [vmem:[%s332_s1 + $0x1] ss:$16 sm:$0xc] %vm7_vm0, %v12_v17  }
  0x7e   :  { %134 = vst.msk [vmem:[%s332_s1 + $0x3] ss:$16 sm:$0x3] %vm7_vm0, %v28_v18   ;;  %135 = vst.msk [vmem:[%s332_s1 + $0x3] ss:$16 sm:$0xc] %vm7_vm0, %v28_v18  }
  0x80   :  { %v20_v19 = vpop.permute.xlu0 %19  }
  0x81   :  { %v36_v20 = vpop.permute.xlu1 %35   ;;  %132 = vst.msk [vmem:[%s332_s1 + $0x2] ss:$16 sm:$0x3] %vm7_vm0, %v20_v19   ;;  %133 = vst.msk [vmem:[%s332_s1 + $0x2] ss:$16 sm:$0xc] %vm7_vm0, %v20_v19  }
  0x82   :  { %136 = vst.msk [vmem:[%s332_s1 + $0x4] ss:$16 sm:$0x3] %vm7_vm0, %v36_v20   ;;  %137 = vst.msk [vmem:[%s332_s1 + $0x4] ss:$16 sm:$0xc] %vm7_vm0, %v36_v20  }
  0x84   :  { %v44_v21 = vpop.permute.xlu0 %43  }
  0x85   :  { %v52_v22 = vpop.permute.xlu1 %51   ;;  %138 = vst.msk [vmem:[%s332_s1 + $0x5] ss:$16 sm:$0x3] %vm7_vm0, %v44_v21   ;;  %139 = vst.msk [vmem:[%s332_s1 + $0x5] ss:$16 sm:$0xc] %vm7_vm0, %v44_v21  }
  0x86   :  { %140 = vst.msk [vmem:[%s332_s1 + $0x6] ss:$16 sm:$0x3] %vm7_vm0, %v52_v22   ;;  %141 = vst.msk [vmem:[%s332_s1 + $0x6] ss:$16 sm:$0xc] %vm7_vm0, %v52_v22  }
  0x88   :  { %v60_v23 = vpop.permute.xlu0 %59  }
  0x89   :  { %v68_v24 = vpop.permute.xlu1 %67   ;;  %142 = vst.msk [vmem:[%s332_s1 + $0x7] ss:$16 sm:$0x3] %vm7_vm0, %v60_v23   ;;  %143 = vst.msk [vmem:[%s332_s1 + $0x7] ss:$16 sm:$0xc] %vm7_vm0, %v60_v23  }
  0x8a   :  { %144 = vst.msk [vmem:[%s332_s1 + $0x8] ss:$16 sm:$0x3] %vm7_vm0, %v68_v24   ;;  %145 = vst.msk [vmem:[%s332_s1 + $0x8] ss:$16 sm:$0xc] %vm7_vm0, %v68_v24  }
  0x8c   :  { %v76_v25 = vpop.permute.xlu0 %75  }
  0x8d   :  { %v84_v26 = vpop.permute.xlu1 %83   ;;  %146 = vst.msk [vmem:[%s332_s1 + $0x9] ss:$16 sm:$0x3] %vm7_vm0, %v76_v25   ;;  %147 = vst.msk [vmem:[%s332_s1 + $0x9] ss:$16 sm:$0xc] %vm7_vm0, %v76_v25  }
  0x8e   :  { %148 = vst.msk [vmem:[%s332_s1 + $0xa] ss:$16 sm:$0x3] %vm7_vm0, %v84_v26   ;;  %149 = vst.msk [vmem:[%s332_s1 + $0xa] ss:$16 sm:$0xc] %vm7_vm0, %v84_v26  }
  0x90   :  { %v92_v27 = vpop.permute.xlu0 %91  }
  0x91   :  { %v100_v28 = vpop.permute.xlu1 %99   ;;  %150 = vst.msk [vmem:[%s332_s1 + $0xb] ss:$16 sm:$0x3] %vm7_vm0, %v92_v27   ;;  %151 = vst.msk [vmem:[%s332_s1 + $0xb] ss:$16 sm:$0xc] %vm7_vm0, %v92_v27  }
  0x92   :  { %152 = vst.msk [vmem:[%s332_s1 + $0xc] ss:$16 sm:$0x3] %vm7_vm0, %v100_v28   ;;  %153 = vst.msk [vmem:[%s332_s1 + $0xc] ss:$16 sm:$0xc] %vm7_vm0, %v100_v28  }
  0x94   :  { %v108_v29 = vpop.permute.xlu0 %107  }
  0x95   :  { %v116_v30 = vpop.permute.xlu1 %115   ;;  %154 = vst.msk [vmem:[%s332_s1 + $0xd] ss:$16 sm:$0x3] %vm7_vm0, %v108_v29   ;;  %155 = vst.msk [vmem:[%s332_s1 + $0xd] ss:$16 sm:$0xc] %vm7_vm0, %v108_v29  }
  0x96   :  { %156 = vst.msk [vmem:[%s332_s1 + $0xe] ss:$16 sm:$0x3] %vm7_vm0, %v116_v30   ;;  %157 = vst.msk [vmem:[%s332_s1 + $0xe] ss:$16 sm:$0xc] %vm7_vm0, %v116_v30  }
  0x98   :  { %v124_v31 = vpop.permute.xlu0 %123  }
  0x99   :  { %158 = vst.msk [vmem:[%s332_s1 + $0xf] ss:$16 sm:$0x3] %vm7_vm0, %v124_v31   ;;  %159 = vst.msk [vmem:[%s332_s1 + $0xf] ss:$16 sm:$0xc] %vm7_vm0, %v124_v31  }

// kernel: first_conv_forward.1
= control target key start
LH: loop header
LB: loop body
LE: loop exit
PB: predicated region body
PF: predicated region fallthrough
CT: control target
= control target key end

     0   :  { %s1566_s15 = smov 0   ;;  %s1975_s0 = inlined_call_operand.vmem [shape: bf16[2,48,128], index: 0, kind: input, shape index: {}]   ;;  %s1976_s1 = inlined_call_operand.vmem [shape: bf16[64,432], index: 1, kind: input, shape index: {}]   ;;  %s1977_s2 = inlined_call_operand.vmem [shape: f32[64,1], index: 2, kind: input, shape index: {}]   ;;  %s1978_s3 = inlined_call_operand.vmem [shape: f32[1,30], index: 3, kind: input, shape index: {}]   ;;  %s1979_s4 = inlined_call_operand.vmem [shape: f32[2,16,4,4], index: 4, kind: output, shape index: {}]  }
   0x1 LB: > { %s1344_s16 = sadd.s32 4294967295, %s1525_s15   ;;  %p1348_p0 = scmp.ge.s32.totalorder %s1525_s15, 1  ;;  %s1525_s15 = sphi %s1566_s15, %s14_s15  }
   0x2   : > { %p162_p1 = scmp.lt.s32.totalorder %s1525_s15, 3 }
   0x4   : > { %p163_p2 = pnand %p1348_p0, %p162_p1 }
   0x5   : > { %p188_p3 = scmp.lt.s32.totalorder (!%p163_p2), %s1344_s16, 1  ;;  %v1527_v0 = vmov (!%p163_p2), 0   ;;  %s1528_s21 = smov (!%p163_p2), 120   ;;  %vm223_vm0 = vcmask (!%p163_p2), 244736   ;;  %v1497_v25 = vld [vmem:[%s1976_s1 + $0x4] ss:$16 sps:$4 sm:$0xff] (!%p163_p2)  }
   0x6   : > { %166 = sbr.rel (%p163_p2) target bundleno = 920 (0x398), region = 36  ;;  %736 = vmatprep.subr.bf16.mxu1 (!%p163_p2), %v1527_v0  ;;  %1467 = vset.pattern.permute.xlu1 (!%p163_p2), %v1527_v0  ;;  %s1529_s22 = smov (!%p163_p2), 126   ;;  %v1500_v29 = vld [vmem:[%s1976_s1 + $0xc] ss:$16 sps:$4 sm:$0xff] (!%p163_p2)   ;;  %vm658_vm1 = vcmask (!%p163_p2), 392192   ;;  %v540_v31 = vld [vmem:[%s1977_s2 + $0x30] sm:$0xff] (!%p163_p2) }
   0x7   : > { %1466 = vset.pattern.permute.xlu0 (!%p163_p2), %v1527_v0  ;;  %s1530_s23 = smov (!%p163_p2), 116   ;;  %s1531_s24 = smov (!%p163_p2), 122   ;;  %703 = vmatprep.mubr.bf16.mxu0 (!%p163_p2), %v1497_v25  ;;  %v541_v30 = vld [vmem:[%s1977_s2 + $0x38] sm:$0xff] (!%p163_p2)  ;;  %v536_v32 = vld [vmem:[%s1977_s2 + $0x10] sm:$0xff] (!%p163_p2)  ;;  %v538_v34 = vld [vmem:[%s1977_s2 + $0x20] sm:$0xff] (!%p163_p2)  ;;  %vm818_vm2 = vcmask (!%p163_p2), 7168  }
   0x8   : > { %s1532_s25 = smov (!%p163_p2), 127   ;;  %s1533_s26 = smov (!%p163_p2), 115   ;;  %1395 = vmatprep.mubr.msk.bf16.mxu1 (!%p163_p2), %vm658_vm1, %v1500_v29  ;;  %v537_v33 = vld [vmem:[%s1977_s2 + $0x18] sm:$0xff] (!%p163_p2)  ;;  %v539_v35 = vld [vmem:[%s1977_s2 + $0x28] sm:$0xff] (!%p163_p2)  ;;  %v1506_v29 = vld [vmem:[%s1976_s1 + $0x44] ss:$16 sps:$4 sm:$0xff] (!%p163_p2)  }
   0x9   : > { %s1534_s27 = smov (!%p163_p2), 121   ;;  %s1535_s30 = smov (!%p163_p2), 114   ;;  %vm1080_vm4 = vcmask (!%p163_p2), 24576  }
   0xa   : > { %s1536_s29 = smov (!%p163_p2), 1   ;;  %s1537_s10 = smov (!%p163_p2), 6  }
   0xb   : > { %s1539_s11 = smov (!%p163_p2), 110   ;;  %s1540_s12 = smov (!%p163_p2), 104  }
   0xd   : > { %s1981_s16 = smov (!%p188_p3, %s1344_s16), 1 }
   0xe   : > { %s1443_s17 = smul.u32 24, %s1981_s16  ;;  %s1402_s13 = sshll.u32 %s1981_s16, 6 }
   0xf   : > { %s1826_s18 = scalar_lea.vmem %s1979_s4, %s1402_s13 }
  0x10   : > { %s1583_s20 = scalar_lea.vmem %s1975_s0, %s1443_s17 }
  0x11   : > { %v1468_v1 = vld [vmem:[%s1583_s20 + $0x8] sm:$0xff]   ;;  %v1469_v2 = vld [vmem:[%s1583_s20 + $0x10] sm:$0xff]   ;;  %v1471_v4 = vld [vmem:[%s1583_s20] sm:$0xff]  }
  0x12   : > { %382 = vrot.lane.b32.xlu0 %v1468_v1, %s1528_s21  ;;  %v1470_v3 = vld [vmem:[%s1583_s20 + $0x10] sm:$0xff]   ;;  %285 = vrot.lane.b32.xlu1 %v1469_v2, %s1529_s22  ;;  %v1472_v5 = vld [vmem:[%s1583_s20] sm:$0xff]  }
  0x13   : > { %v1473_v6 = vld [vmem:[%s1583_s20 + $0x8] sm:$0xff]   ;;  %v1475_v8 = vld [vmem:[%s1583_s20 + $0x10] sm:$0xff]   ;;  %v1477_v10 = vld [vmem:[%s1583_s20] sm:$0xff]  }
  0x14   : > { %v1474_v7 = vld [vmem:[%s1583_s20 + $0x8] sm:$0xff]   ;;  %v1476_v9 = vld [vmem:[%s1583_s20 + $0x10] sm:$0xff]   ;;  %v1478_v11 = vld [vmem:[%s1583_s20] sm:$0xff]  }
  0x15   : > { %v1479_v12 = vld [vmem:[%s1583_s20] sm:$0xff]   ;;  %v1480_v13 = vld [vmem:[%s1583_s20 + $0x8] sm:$0xff]   ;;  %v1494_v18 = vld [vmem:[%s1583_s20 + $0x10] sm:$0xff]  }
  0x16   : > { %384 = vrot.lane.b32.xlu0 %v1470_v3, %s1528_s21  ;;  %413 = vrot.lane.b32.xlu1 %v1471_v4, %s1530_s23  ;;  %v1481_v14 = vld [vmem:[%s1583_s20 + $0x8] sm:$0xff]   ;;  %v1492_v16 = vld [vmem:[%s1583_s20] sm:$0xff]   ;;  %226 = vst.msk [vmem:[#allocation2 + $0x10] sm:$0xff] %vm223_vm0, %v1494_v18 }
  0x17   : > { %v1482_v15 = vld [vmem:[%s1583_s20 + $0x8] sm:$0xff]   ;;  %224 = vst.msk [vmem:[#allocation2] sm:$0xff] %vm223_vm0, %v1492_v16  ;;  %v1483_v19 = vld [vmem:[%s1583_s20 + $0x10] sm:$0xff]   ;;  %v1486_v22 = vld [vmem:[%s1583_s20] sm:$0xff]  }
  0x18   : > { %v1493_v17 = vld [vmem:[%s1583_s20 + $0x8] sm:$0xff]   ;;  %v1484_v20 = vld [vmem:[%s1583_s20 + $0x10] sm:$0xff]   ;;  %v1487_v23 = vld [vmem:[%s1583_s20] sm:$0xff]  }
  0x19   : > { %225 = vst.msk [vmem:[#allocation2 + $0x8] sm:$0xff] %vm223_vm0, %v1493_v17  ;;  %v1485_v21 = vld [vmem:[%s1583_s20 + $0x10] sm:$0xff]   ;;  %v1488_v24 = vld [vmem:[%s1583_s20] sm:$0xff]   ;;  %v1489_v26 = vld [vmem:[%s1583_s20 + $0x8] sm:$0xff]  }
  0x1a   : > { %314 = vrot.lane.b32.xlu0 %v1472_v5, %s1531_s24  ;;  %415 = vrot.lane.b32.xlu1 %v1473_v6, %s1530_s23  ;;  %v1490_v27 = vld [vmem:[%s1583_s20 + $0x8] sm:$0xff]   ;;  %v1491_v28 = vld [vmem:[%s1583_s20 + $0x10] sm:$0xff]  }
  0x1d   : > { %v509_v54 = vld [vmem:[#allocation2 + $0x10] sm:$0xff] }
  0x1e   : > { %316 = vrot.lane.b32.xlu0 %v1474_v7, %s1531_s24  ;;  %417 = vrot.lane.b32.xlu1 %v1475_v8, %s1530_s23  ;;  %v507_v42 = vld [vmem:[#allocation2] sm:$0xff] }
  0x20   : > { %v508_v49 = vld [vmem:[#allocation2 + $0x8] sm:$0xff] }
  0x22   : > { %318 = vrot.lane.b32.xlu0 %v1476_v9, %s1531_s24  ;;  %248 = vrot.lane.b32.xlu1 %v1477_v10, %s1532_s25 }
  0x26   : > { %446 = vrot.lane.b32.xlu0 %v1478_v11, %s1533_s26  ;;  %347 = vrot.lane.b32.xlu1 %v1479_v12, %s1534_s27 }
  0x2a   : > { %250 = vrot.lane.b32.xlu0 %v1480_v13, %s1532_s25  ;;  %448 = vrot.lane.b32.xlu1 %v1481_v14, %s1533_s26 }
  0x2e   : > { %349 = vrot.lane.b32.xlu0 %v1482_v15, %s1534_s27  ;;  %252 = vrot.lane.b32.xlu1 %v1483_v19, %s1532_s25 }
  0x32   : > { %450 = vrot.lane.b32.xlu0 %v1484_v20, %s1533_s26  ;;  %351 = vrot.lane.b32.xlu1 %v1485_v21, %s1534_s27 }
  0x36   : > { %281 = vrot.lane.b32.xlu0 %v1486_v22, %s1529_s22  ;;  %479 = vrot.lane.b32.xlu1 %v1487_v23, %s1535_s30  ;;  %v1495_v22 = vld [vmem:[%s1976_s1] ss:$16 sps:$4 sm:$0xff]   ;;  %v1501_v23 = vld [vmem:[%s1976_s1 + $0x24] ss:$16 sps:$4 sm:$0xff]  }
  0x3a   : > { %380 = vrot.lane.b32.xlu0 %v1488_v24, %s1528_s21  ;;  %283 = vrot.lane.b32.xlu1 %v1489_v26, %s1529_s22  ;;  %v1498_v26 = vld [vmem:[%s1976_s1 + $0x8] ss:$16 sps:$4 sm:$0xff]  }
  0x3e   : > { %481 = vrot.lane.b32.xlu0 %v1490_v27, %s1535_s30  ;;  %483 = vrot.lane.b32.xlu1 %v1491_v28, %s1535_s30  ;;  %v1503_v27 = vld [vmem:[%s1976_s1 + $0x20] ss:$16 sps:$4 sm:$0xff]   ;;  %v1504_v28 = vld [vmem:[%s1976_s1 + $0x2c] ss:$16 sps:$4 sm:$0xff]  }
  0x42   : > { %579 = vperm.xlu1 %1467, %v541_v30   ;;  %574 = vperm.xlu0 %1466, %v540_v31   ;;  %v1509_v30 = vld [vmem:[%s1976_s1 + $0x40] ss:$16 sps:$4 sm:$0xff]   ;;  %v1510_v31 = vld [vmem:[%s1976_s1 + $0x4c] ss:$16 sps:$4 sm:$0xff]  }
  0x46   : > { %554 = vperm.xlu1 %1467, %v536_v32   ;;  %559 = vperm.xlu0 %1466, %v537_v33   ;;  %v1512_v32 = vld [vmem:[%s1976_s1 + $0x64] ss:$16 sps:$4 sm:$0xff]   ;;  %v1514_v33 = vld [vmem:[%s1976_s1 + $0x48] ss:$16 sps:$4 sm:$0xff]  }
  0x4a   : > { %564 = vperm.xlu1 %1467, %v538_v34   ;;  %569 = vperm.xlu0 %1466, %v539_v35   ;;  %v1515_v34 = vld [vmem:[%s1976_s1 + $0x60] ss:$16 sps:$4 sm:$0xff]   ;;  %v1516_v35 = vld [vmem:[%s1976_s1 + $0x6c] ss:$16 sps:$4 sm:$0xff]  }
  0x84   : > { %v383_v36 = vpop.permute.xlu0 %382  ;;  %v286_v37 = vpop.permute.xlu1 %285 }
  0x85   : > { %390 = vst.msk [vmem:[#allocation2 + $0x80] sm:$0xff] %vm223_vm0, %v383_v36  ;;  %292 = vst.msk [vmem:[#allocation2 + $0x40] sm:$0xff] %vm223_vm0, %v286_v37  ;;  %v1518_v36 = vld [vmem:[%s1976_s1 + $0x68] ss:$16 sps:$4 sm:$0xff]  }
  0x88   : > { %v385_v38 = vpop.permute.xlu0 %384  ;;  %v414_v39 = vpop.permute.xlu1 %413 }
  0x89   : > { %391 = vst.msk [vmem:[#allocation2 + $0x88] sm:$0xff] %vm223_vm0, %v385_v38  ;;  %422 = vst.msk [vmem:[#allocation2 + $0x90] sm:$0xff] %vm223_vm0, %v414_v39 }
  0x8c   : > { %v315_v40 = vpop.permute.xlu0 %314  ;;  %v523_v41 = vld [vmem:[#allocation2 + $0x80] sm:$0xff]  ;;  %v416_v43 = vpop.permute.xlu1 %415 }
  0x8d   : > { %323 = vst.msk [vmem:[#allocation2 + $0x48] sm:$0xff] %vm223_vm0, %v315_v40  ;;  %737 = vmatpush1.bf16.msra.mxu1 %v523_v41  ;;  %v515_v44 = vld [vmem:[#allocation2 + $0x40] sm:$0xff]  ;;  %423 = vst.msk [vmem:[#allocation2 + $0x98] sm:$0xff] %vm223_vm0, %v416_v43 }
  0x8e   : > { %738 = vmatprep.subr.bf16.mxu1 %v1527_v0  ;;  %1403 = vmatprep.subr.bf16.mxu0 %v515_v44 }
  0x8f   : > { %1404 = vmatpush3.bf16.msra.mxu0 %v507_v42 }
  0x90   : > { %v317_v45 = vpop.permute.xlu0 %316  ;;  %v524_v46 = vld [vmem:[#allocation2 + $0x88] sm:$0xff]  ;;  %v418_v47 = vpop.permute.xlu1 %417  ;;  %v525_v48 = vld [vmem:[#allocation2 + $0x90] sm:$0xff] }
  0x91   : > { %324 = vst.msk [vmem:[#allocation2 + $0x50] sm:$0xff] %vm223_vm0, %v317_v45  ;;  %739 = vmatpush1.bf16.msra.mxu1 %v524_v46  ;;  %424 = vst.msk [vmem:[#allocation2 + $0xa0] sm:$0xff] %vm223_vm0, %v418_v47 }
  0x92   : > { %740 = vmatprep.subr.bf16.mxu1 %v1527_v0 }
  0x94   : > { %v319_v50 = vpop.permute.xlu0 %318  ;;  %v516_v51 = vld [vmem:[#allocation2 + $0x48] sm:$0xff]  ;;  %v249_v52 = vpop.permute.xlu1 %248  ;;  %v526_v53 = vld [vmem:[#allocation2 + $0x98] sm:$0xff] }
  0x95   : > { %325 = vst.msk [vmem:[#allocation2 + $0x58] sm:$0xff] %vm223_vm0, %v319_v50  ;;  %741 = vmatpush1.bf16.msra.mxu1 %v525_v48  ;;  %1405 = vmatprep.subr.bf16.mxu0 %v516_v51  ;;  %257 = vst.msk [vmem:[#allocation2 + $0x18] sm:$0xff] %vm223_vm0, %v249_v52 }
  0x96   : > { %1406 = vmatpush3.bf16.msra.mxu0 %v508_v49  ;;  %742 = vmatprep.subr.bf16.mxu1 %v1527_v0 }
  0x98   : > { %v447_v55 = vpop.permute.xlu0 %446  ;;  %v517_v56 = vld [vmem:[#allocation2 + $0x50] sm:$0xff]  ;;  %v348_v57 = vpop.permute.xlu1 %347  ;;  %v527_v58 = vld [vmem:[#allocation2 + $0xa0] sm:$0xff] }
  0x99   : > { %455 = vst.msk [vmem:[#allocation2 + $0xa8] sm:$0xff] %vm223_vm0, %v447_v55  ;;  %743 = vmatpush1.bf16.msra.mxu1 %v526_v53  ;;  %1407 = vmatprep.subr.bf16.mxu0 %v517_v56  ;;  %356 = vst.msk [vmem:[#allocation2 + $0x60] sm:$0xff] %vm223_vm0, %v348_v57 }
  0x9a   : > { %744 = vmatprep.subr.bf16.mxu1 %v1527_v0  ;;  %1408 = vmatpush3.bf16.msra.mxu0 %v509_v54 }
  0x9c   : > { %v251_v59 = vpop.permute.xlu0 %250  ;;  %v518_v60 = vld [vmem:[#allocation2 + $0x58] sm:$0xff]  ;;  %v449_v61 = vpop.permute.xlu1 %448 }
  0x9d   : > { %258 = vst.msk [vmem:[#allocation2 + $0x20] sm:$0xff] %vm223_vm0, %v251_v59  ;;  %745 = vmatpush1.bf16.msra.mxu1 %v527_v58  ;;  %1409 = vmatprep.subr.bf16.mxu0 %v518_v60  ;;  %v510_v62 = vld [vmem:[#allocation2 + $0x18] sm:$0xff]  ;;  %456 = vst.msk [vmem:[#allocation2 + $0xb0] sm:$0xff] %vm223_vm0, %v449_v61 }
  0x9e   : > { %746 = vmatprep.subr.bf16.mxu1 %v1527_v0  ;;  %1410 = vmatpush3.bf16.msra.mxu0 %v510_v62 }
  0xa0   : > { %v350_v63 = vpop.permute.xlu0 %349  ;;  %v528_v1 = vld [vmem:[#allocation2 + $0xa8] sm:$0xff]  ;;  %v253_v2 = vpop.permute.xlu1 %252  ;;  %v519_v3 = vld [vmem:[#allocation2 + $0x60] sm:$0xff] }
  0xa1   : > { %357 = vst.msk [vmem:[#allocation2 + $0x68] sm:$0xff] %vm223_vm0, %v350_v63  ;;  %747 = vmatpush1.bf16.msra.mxu1 %v528_v1  ;;  %259 = vst.msk [vmem:[#allocation2 + $0x28] sm:$0xff] %vm223_vm0, %v253_v2  ;;  %1411 = vmatprep.subr.bf16.mxu0 %v519_v3 }
  0xa2   : > { %748 = vmatprep.subr.bf16.mxu1 %v1527_v0 }
  0xa4   : > { %v451_v4 = vpop.permute.xlu0 %450  ;;  %v511_v5 = vld [vmem:[#allocation2 + $0x20] sm:$0xff]  ;;  %v352_v6 = vpop.permute.xlu1 %351  ;;  %v529_v7 = vld [vmem:[#allocation2 + $0xb0] sm:$0xff] }
  0xa5   : > { %457 = vst.msk [vmem:[#allocation2 + $0xb8] sm:$0xff] %vm223_vm0, %v451_v4  ;;  %1412 = vmatpush3.bf16.msra.mxu0 %v511_v5  ;;  %358 = vst.msk [vmem:[#allocation2 + $0x70] sm:$0xff] %vm223_vm0, %v352_v6  ;;  %749 = vmatpush1.bf16.msra.mxu1 %v529_v7 }
  0xa6   : > { %750 = vmatprep.subr.bf16.mxu1 %v1527_v0 }
  0xa8   : > { %v282_v8 = vpop.permute.xlu0 %281  ;;  %v520_v9 = vld [vmem:[#allocation2 + $0x68] sm:$0xff]  ;;  %v480_v10 = vpop.permute.xlu1 %479 }
  0xa9   : > { %290 = vst.msk [vmem:[#allocation2 + $0x30] sm:$0xff] %vm223_vm0, %v282_v8  ;;  %1413 = vmatprep.subr.bf16.mxu0 %v520_v9  ;;  %v512_v11 = vld [vmem:[#allocation2 + $0x28] sm:$0xff]  ;;  %488 = vst.msk [vmem:[#allocation2 + $0xc0] sm:$0xff] %vm223_vm0, %v480_v10 }
  0xaa   : > { %1414 = vmatpush3.bf16.msra.mxu0 %v512_v11 }
  0xac   : > { %v381_v12 = vpop.permute.xlu0 %380  ;;  %v530_v13 = vld [vmem:[#allocation2 + $0xb8] sm:$0xff]  ;;  %v284_v14 = vpop.permute.xlu1 %283  ;;  %v521_v15 = vld [vmem:[#allocation2 + $0x70] sm:$0xff] }
  0xad   : > { %389 = vst.msk [vmem:[#allocation2 + $0x78] sm:$0xff] %vm223_vm0, %v381_v12  ;;  %751 = vmatpush1.bf16.msra.mxu1 %v530_v13  ;;  %291 = vst.msk [vmem:[#allocation2 + $0x38] sm:$0xff] %vm223_vm0, %v284_v14  ;;  %1415 = vmatprep.subr.bf16.mxu0 %v521_v15 }
  0xae   : > { %752 = vmatprep.subr.bf16.mxu1 %v1527_v0 }
  0xb0   : > { %v482_v16 = vpop.permute.xlu0 %481  ;;  %v513_v17 = vld [vmem:[#allocation2 + $0x30] sm:$0xff]  ;;  %v531_v18 = vld [vmem:[#allocation2 + $0xc0] sm:$0xff]  ;;  %v484_v19 = vpop.permute.xlu1 %483 }
  0xb1   : > { %489 = vst.msk [vmem:[#allocation2 + $0xc8] sm:$0xff] %vm223_vm0, %v482_v16  ;;  %1416 = vmatpush3.bf16.msra.mxu0 %v513_v17  ;;  %753 = vmatpush1.bf16.msra.mxu1 %v531_v18  ;;  %490 = vst.msk [vmem:[#allocation2 + $0xd0] sm:$0xff] %vm223_vm0, %v484_v19 }
  0xb2   : > { %754 = vmatprep.subr.bf16.mxu1 %v1527_v0 }
  0xb4   : > { %v522_v20 = vld [vmem:[#allocation2 + $0x78] sm:$0xff] }
  0xb5   : > { %1417 = vmatprep.subr.bf16.mxu0 %v522_v20  ;;  %v514_v21 = vld [vmem:[#allocation2 + $0x38] sm:$0xff] }
  0xb6   : > { %1418 = vmatpush3.bf16.msra.mxu0 %v514_v21 }
  0xb8   : > { %v532_v24 = vld [vmem:[#allocation2 + $0xc8] sm:$0xff]  ;;  %v533_v25 = vld [vmem:[#allocation2 + $0xd0] sm:$0xff] }
  0xb9   : > { %704 = vmatmul.mubr.bf16.vlgmr.msra.gmra.mrb[0].mxu0 %v1495_v22  ;;  %755 = vmatpush1.bf16.msra.mxu1 %v532_v24 }
  0xba   : > { %756 = vmatprep.subr.bf16.mxu1 %v1527_v0  ;;  %711 = vmatprep.mubr.bf16.mxu0 %v1501_v23  ;;  %v1508_v0 = vld [vmem:[%s1976_s1 + $0x28] ss:$16 sps:$4 sm:$0xff]  }
  0xbd   : > { %757 = vmatpush1.bf16.msra.mxu1 %v533_v25 }
  0xc0   : > { %769 = vmatmul.mubr.bf16.vlgmr.msra.gmra.mrb[0].mxu1 %v1498_v26 }
  0xc1   : > { %712 = vmatmul.mubr.bf16.gmra.mrb[4].mxu0 %v1503_v27  ;;  %1396 = vmatprep.mubr.msk.bf16.mxu1 %vm658_vm1, %v1504_v28  ;;  %v580_v39 = vpop.permute.xlu1 %579  ;;  %v575_v44 = vpop.permute.xlu0 %574 }
  0xc2   : > { %719 = vmatprep.mubr.bf16.mxu0 %v1506_v29 }
  0xc5   : > { %v555_v46 = vpop.permute.xlu1 %554  ;;  %v560_v57 = vpop.permute.xlu0 %559 }
  0xc8   : > { %777 = vmatmul.mubr.bf16.gmra.mrb[4].mxu1 %v1508_v0 }
  0xc9   : > { %720 = vmatmul.mubr.bf16.gmra.mrb[8].mxu0 %v1509_v30  ;;  %1397 = vmatprep.mubr.msk.bf16.mxu1 %vm658_vm1, %v1510_v31  ;;  %v565_v59 = vpop.permute.xlu1 %564  ;;  %v570_v10 = vpop.permute.xlu0 %569 }
  0xca   : > { %727 = vmatprep.mubr.bf16.mxu0 %v1512_v32 }
  0xd0   : > { %785 = vmatmul.mubr.bf16.gmra.mrb[8].mxu1 %v1514_v33  ;;  %v534_v33 = vld [vmem:[%s1977_s2] sm:$0xff] }
  0xd1   : > { %728 = vmatmul.mubr.bf16.gmra.mrb[12].mxu0 %v1515_v34  ;;  %1398 = vmatprep.mubr.msk.bf16.mxu1 %vm658_vm1, %v1516_v35  ;;  %v535_v34 = vld [vmem:[%s1977_s2 + $0x8] sm:$0xff] }
  0xd8   : > { %793 = vmatmul.mubr.bf16.gmra.mrb[12].mxu1 %v1518_v36 }
 0x18c   : > { %v1419_v37 = vpop.f32.mrb[0].mxu0 }
 0x18d   : > { %v1420_v38 = vpop.f32.mrb[1].mxu0 }
 0x18e   : > { %v1731_v40 = vadd.f32 %v1420_v38, %v1419_v37  ;;  %v1422_v41 = vpop.f32.mrb[2].mxu0  ;;  %v849_v37 = vlaneseq  ;;  %v1399_v38 = vld [vmem:[%s1978_s3] ss:$0 sm:$0xff] }
 0x18f   : > { %v1423_v42 = vpop.f32.mrb[3].mxu0 }
 0x190   : > { %v1733_v43 = vadd.f32 %v1423_v42, %v1422_v41  ;;  %v850_v42 = vand.u32 127, %v849_v37 }
 0x192   : > { %vm851_vm3 = vcmp.ge.s32.totalorder %v850_v42, 6 }
 0x193   : > { %v1735_v45 = vpop.f32.mrb[0].mxu1 }
 0x194   : > { %v772_v47 = vpop.f32.mrb[1].mxu1  ;;  %v1425_v48 = vpop.f32.mrb[4].mxu0 }
 0x195   : > { %v1426_v49 = vpop.f32.mrb[5].mxu0  ;;  %v1737_v50 = vpop.f32.mrb[2].mxu1 }
 0x196   : > { %v1427_v51 = vadd.f32 %v1426_v49, %v1425_v48  ;;  %v1428_v52 = vpop.f32.mrb[6].mxu0  ;;  %v775_v53 = vpop.f32.mrb[3].mxu1 }
 0x197   : > { %v1429_v54 = vpop.f32.mrb[7].mxu0 }
 0x198   : > { %v1430_v55 = vadd.f32 %v1429_v54, %v1428_v52  ;;  %v714_v56 = vadd.f32 %v1427_v51, %v555_v46 }
 0x19a   : > { %v717_v60 = vadd.f32 %v1430_v55, %v560_v57 }
 0x19b   : > { %v778_v58 = vpop.f32.mrb[4].mxu1 }
 0x19c   : > { %v1739_v61 = vadd.f32 %v778_v58, %v714_v56  ;;  %v1431_v62 = vpop.f32.mrb[8].mxu0  ;;  %v780_v63 = vpop.f32.mrb[5].mxu1 }
 0x19d   : > { %v1432_v1 = vpop.f32.mrb[9].mxu0  ;;  %v781_v2 = vpop.f32.mrb[6].mxu1 }
 0x19e   : > { %v1433_v3 = vadd.f32 %v1432_v1, %v1431_v62  ;;  %v1741_v4 = vadd.f32 %v781_v2, %v717_v60  ;;  %v1434_v5 = vpop.f32.mrb[10].mxu0  ;;  %v783_v6 = vpop.f32.mrb[7].mxu1  ;;  %v803_v35 = vmax.f32 %v1739_v61, 0.0 }
 0x19f   : > { %v1435_v7 = vpop.f32.mrb[11].mxu0 }
 0x1a0   : > { %v1436_v8 = vadd.f32 %v1435_v7, %v1434_v5  ;;  %v722_v9 = vadd.f32 %v1433_v3, %v565_v59  ;;  %v804_v36 = vmax.f32 %v1741_v4, 0.0 }
 0x1a2   : > { %v725_v12 = vadd.f32 %v1436_v8, %v570_v10 }
 0x1a3   : > { %v786_v11 = vpop.f32.mrb[8].mxu1 }
 0x1a4   : > { %v787_v13 = vadd.f32 %v786_v11, %v722_v9  ;;  %v1437_v14 = vpop.f32.mrb[12].mxu0  ;;  %v788_v15 = vpop.f32.mrb[9].mxu1 }
 0x1a5   : > { %v1438_v16 = vpop.f32.mrb[13].mxu0  ;;  %v789_v17 = vpop.f32.mrb[10].mxu1  ;;  %v875_v15 = vshrl.u32 %v849_v37, 7 }
 0x1a6   : > { %v1439_v18 = vadd.f32 %v1438_v16, %v1437_v14  ;;  %v790_v19 = vadd.f32 %v789_v17, %v725_v12  ;;  %v1440_v20 = vpop.f32.mrb[14].mxu0  ;;  %v791_v21 = vpop.f32.mrb[11].mxu1  ;;  %v805_v48 = vmax.f32 %v787_v13, 0.0  ;;  %v1538_v13 = vmov 1966171168  }
 0x1a7   : > { %v1441_v22 = vpop.f32.mrb[15].mxu0 }
 0x1a8   : > { %v1442_v23 = vadd.f32 %v1441_v22, %v1440_v20  ;;  %v730_v24 = vadd.f32 %v1439_v18, %v575_v44  ;;  %v806_v52 = vmax.f32 %v790_v19, 0.0  ;;  %v970_v22 = vsub.s32 0, %v875_v15 }
 0x1aa   : > { %v733_v28 = vadd.f32 %v1442_v23, %v580_v39 }
 0x1ab   : > { %v794_v25 = vpop.f32.mrb[12].mxu1 }
 0x1ac   : > { %v795_v26 = vadd.f32 %v794_v25, %v730_v24  ;;  %v796_v27 = vpop.f32.mrb[13].mxu1 }
 0x1ad   : > { %v797_v29 = vpop.f32.mrb[14].mxu1 }
 0x1ae   : > { %v807_v0 = vmax.f32 %v795_v26, 0.0  ;;  %v798_v30 = vadd.f32 %v797_v29, %v733_v28  ;;  %v799_v31 = vpop.f32.mrb[15].mxu1 }
 0x1b0   : > { %v808_v32 = vmax.f32 %v798_v30, 0.0  ;;  %835 = vrot.lane.b32.xlu1 %v807_v0, %s1536_s29 }
 0x1b2   : > { %837 = vrot.lane.b32.xlu0 %v808_v32, %s1536_s29 }
 0x1b4   : > { %544 = vperm.xlu1 %1467, %v534_v33  }
 0x1b6   : > { %549 = vperm.xlu0 %1466, %v535_v34  }
 0x1b8   : > { %812 = vrot.lane.b32.xlu1 %v803_v35, %s1536_s29 }
 0x1ba   : > { %814 = vrot.lane.b32.xlu0 %v804_v36, %s1536_s29 }
 0x222   : > { %v836_v39 = vpop.permute.xlu1 %835 }
 0x223   : > { %v841_v41 = vsel %vm818_vm2, 0.0, %v836_v39 }
 0x224   : > { %v843_v44 = vmul.f32 %v1399_v38, %v841_v41  ;;  %v838_v46 = vpop.permute.xlu0 %837 }
 0x225   : > { %v842_v47 = vsel %vm818_vm2, 0.0, %v838_v46 }
 0x226   : > { %v845_v49 = vmax.f32 %v807_v0, %v843_v44  ;;  %v844_v51 = vmul.f32 %v1399_v38, %v842_v47 }
 0x228   : > { %v846_v53 = vmax.f32 %v808_v32, %v844_v51  ;;  %v847_v54 = vmax.f32 %v805_v48, %v845_v49 }
 0x22a   : > { %v854_v55 = vsel %vm851_vm3, %v847_v54, 0.0  ;;  %v848_v56 = vmax.f32 %v806_v52, %v846_v53 }
 0x22b   : > { %860 = vrot.lane.b32.xlu1 %v854_v55, %s1537_s10 }
 0x22c   : > { %v855_v57 = vsel %vm851_vm3, %v848_v56, 0.0 }
 0x22d   : > { %862 = vrot.lane.b32.xlu0 %v855_v57, %s1537_s10 }
 0x233   : > { %v545_v58 = vpop.permute.xlu1 %544 }
 0x234   : > { %v706_v59 = vadd.f32 %v1731_v40, %v545_v58 }
 0x235   : > { %v550_v60 = vpop.permute.xlu0 %549 }
 0x236   : > { %v771_v61 = vadd.f32 %v1735_v45, %v706_v59  ;;  %v709_v62 = vadd.f32 %v1733_v43, %v550_v60  ;;  %v872_v43 = vunpack.c.l.s4 %v1538_v13 }
 0x237   : > { %v813_v63 = vpop.permute.xlu1 %812 }
 0x238   : > { %v774_v1 = vadd.f32 %v1737_v50, %v709_v62  ;;  %v819_v2 = vsel %vm818_vm2, 0.0, %v813_v63  ;;  %v801_v6 = vmax.f32 %v771_v61, 0.0  ;;  %v873_v14 = vunpack.c.0.s8 %v872_v43 }
 0x239   : > { %v827_v3 = vmul.f32 %v1399_v38, %v819_v2  ;;  %v815_v4 = vpop.permute.xlu0 %814 }
 0x23a   : > { %v820_v5 = vsel %vm818_vm2, 0.0, %v815_v4  ;;  %v802_v9 = vmax.f32 %v774_v1, 0.0  ;;  %v876_v50 = vsub.s32 %v873_v14, %v875_v15 }
 0x23b   : > { %v829_v7 = vmax.f32 %v803_v35, %v827_v3  ;;  %v828_v8 = vmul.f32 %v1399_v38, %v820_v5 }
 0x23d   : > { %v830_v10 = vmax.f32 %v804_v36, %v828_v8  ;;  %v831_v40 = vmax.f32 %v801_v6, %v829_v7 }
 0x23f   : > { %v856_v11 = vmax.f32 %v831_v40, %v854_v55  ;;  %v832_v12 = vmax.f32 %v802_v9, %v830_v10 }
 0x241   : > { %v857_v45 = vmax.f32 %v832_v12, %v855_v57 }
 0x29d   : > { %v861_v16 = vpop.permute.xlu1 %860 }
 0x29e   : > { %v866_v17 = vmax.f32 %v856_v11, %v861_v16 }
 0x29f   : > { %v863_v18 = vpop.permute.xlu0 %862 }
 0x2a0   : > { %v870_v19 = vcombine.high %v866_v17, %v866_v17  ;;  %v877_v20 = vrot.slane %v866_v17, %v876_v50  ;;  %v867_v21 = vmax.f32 %v857_v45, %v863_v18 }
 0x2a2   : > { %v884_v23 = vrot.slane %v870_v19, %v876_v50  ;;  %v885_v24 = vcombine.high %v877_v20, %v877_v20  ;;  %v893_v25 = vrot.slane %v877_v20, %v876_v50  ;;  %v919_v26 = vcombine.high %v867_v21, %v867_v21 }
 0x2a3   : > { %v926_v27 = vrot.slane %v867_v21, %v876_v50 }
 0x2a4   : > { %v886_v28 = vcombine.high %v884_v23, %v884_v23  ;;  %v900_v29 = vrot.slane %v884_v23, %v876_v50  ;;  %v907_v0 = vrot.slane %v885_v24, %v876_v50  ;;  %v915_v30 = vcombine.high %v893_v25, %v893_v25 }
 0x2a5   : > { %v971_v31 = vrot.slane %v893_v25, %v970_v22  ;;  %v933_v32 = vrot.slane %v919_v26, %v876_v50  ;;  %v934_v33 = vcombine.high %v926_v27, %v926_v27  ;;  %v942_v34 = vrot.slane %v926_v27, %v876_v50 }
 0x2a6   : > { %v914_v35 = vrot.slane %v886_v28, %v876_v50  ;;  %v916_v36 = vcombine.high %v900_v29, %v900_v29  ;;  %v917_v37 = vcombine.high %v907_v0, %v907_v0  ;;  %v975_v38 = vrot.slane %v907_v0, %v970_v22 }
 0x2a7   : > { %v935_v39 = vcombine.high %v933_v32, %v933_v32  ;;  %v949_v41 = vrot.slane %v933_v32, %v876_v50  ;;  %v956_v42 = vrot.slane %v934_v33, %v876_v50  ;;  %v964_v44 = vcombine.high %v942_v34, %v942_v34  ;;  %1032 = vrot.lane.b32.xlu1 %v971_v31, %s1531_s24 }
 0x2a8   : > { %v1003_v46 = vrot.slane %v942_v34, %v970_v22  ;;  %1034 = vrot.lane.b32.xlu0 %v975_v38, %s1531_s24  ;;  %v979_v47 = vrot.slane %v915_v30, %v970_v22  ;;  %v983_v48 = vrot.slane %v917_v37, %v970_v22  ;;  %v987_v49 = vrot.slane %v900_v29, %v970_v22 }
 0x2a9   : > { %v963_v51 = vrot.slane %v935_v39, %v876_v50  ;;  %v965_v52 = vcombine.high %v949_v41, %v949_v41  ;;  %v966_v53 = vcombine.high %v956_v42, %v956_v42  ;;  %v991_v54 = vrot.slane %v914_v35, %v970_v22 }
 0x2aa   : > { %v1007_v55 = vrot.slane %v956_v42, %v970_v22  ;;  %v995_v56 = vrot.slane %v916_v36, %v970_v22  ;;  %v918_v57 = vcombine.high %v914_v35, %v914_v35  ;;  %v1011_v58 = vrot.slane %v964_v44, %v970_v22 }
 0x2ab   : > { %1097 = vrot.lane.b32.xlu1 %v971_v31, %s1530_s23  ;;  %v1015_v59 = vrot.slane %v966_v53, %v970_v22  ;;  %v1019_v60 = vrot.slane %v949_v41, %v970_v22  ;;  %v1023_v61 = vrot.slane %v963_v51, %v970_v22  ;;  %v1765_v62 = vrot.slane %v965_v52, %v970_v22 }
 0x2ac   : > { %1099 = vrot.lane.b32.xlu0 %v975_v38, %s1530_s23  ;;  %v999_v63 = vrot.slane %v918_v57, %v970_v22  ;;  %v967_v1 = vcombine.high %v963_v51, %v963_v51 }
 0x2ae   : > { %v1768_v2 = vrot.slane %v967_v1, %v970_v22 }
 0x2af   : > { %1161 = vrot.lane.b32.xlu1 %v971_v31, %s1539_s11 }
 0x2b0   : > { %1163 = vrot.lane.b32.xlu0 %v975_v38, %s1539_s11 }
 0x2b3   : > { %1225 = vrot.lane.b32.xlu1 %v971_v31, %s1540_s12 }
 0x2b4   : > { %1227 = vrot.lane.b32.xlu0 %v975_v38, %s1540_s12 }
 0x2b7   : > { %1036 = vrot.lane.b32.xlu1 %v979_v47, %s1531_s24 }
 0x2b8   : > { %1038 = vrot.lane.b32.xlu0 %v983_v48, %s1531_s24 }
 0x2bb   : > { %1040 = vrot.lane.b32.xlu1 %v987_v49, %s1531_s24 }
 0x2bc   : > { %1042 = vrot.lane.b32.xlu0 %v991_v54, %s1531_s24 }
 0x2bf   : > { %1048 = vrot.lane.b32.xlu1 %v1003_v46, %s1531_s24 }
 0x2c0   : > { %1050 = vrot.lane.b32.xlu0 %v1007_v55, %s1531_s24 }
 0x2c3   : > { %1101 = vrot.lane.b32.xlu1 %v979_v47, %s1530_s23 }
 0x2c4   : > { %1103 = vrot.lane.b32.xlu0 %v983_v48, %s1530_s23 }
 0x2c7   : > { %1105 = vrot.lane.b32.xlu1 %v987_v49, %s1530_s23 }
 0x2c8   : > { %1107 = vrot.lane.b32.xlu0 %v991_v54, %s1530_s23 }
 0x2cb   : > { %1113 = vrot.lane.b32.xlu1 %v1003_v46, %s1530_s23 }
 0x2cc   : > { %1115 = vrot.lane.b32.xlu0 %v1007_v55, %s1530_s23 }
 0x2cf   : > { %1165 = vrot.lane.b32.xlu1 %v979_v47, %s1539_s11 }
 0x2d0   : > { %1167 = vrot.lane.b32.xlu0 %v983_v48, %s1539_s11 }
 0x2d3   : > { %1169 = vrot.lane.b32.xlu1 %v987_v49, %s1539_s11 }
 0x2d4   : > { %1171 = vrot.lane.b32.xlu0 %v991_v54, %s1539_s11 }
 0x2d7   : > { %1177 = vrot.lane.b32.xlu1 %v1003_v46, %s1539_s11 }
 0x2d8   : > { %1179 = vrot.lane.b32.xlu0 %v1007_v55, %s1539_s11 }
 0x2db   : > { %1229 = vrot.lane.b32.xlu1 %v979_v47, %s1540_s12 }
 0x2dc   : > { %1231 = vrot.lane.b32.xlu0 %v983_v48, %s1540_s12 }
 0x2df   : > { %1233 = vrot.lane.b32.xlu1 %v987_v49, %s1540_s12 }
 0x2e0   : > { %1235 = vrot.lane.b32.xlu0 %v991_v54, %s1540_s12 }
 0x2e3   : > { %1241 = vrot.lane.b32.xlu1 %v1003_v46, %s1540_s12 }
 0x2e4   : > { %1243 = vrot.lane.b32.xlu0 %v1007_v55, %s1540_s12 }
 0x2e7   : > { %1044 = vrot.lane.b32.xlu1 %v995_v56, %s1531_s24 }
 0x2e8   : > { %1046 = vrot.lane.b32.xlu0 %v999_v63, %s1531_s24 }
 0x2eb   : > { %1052 = vrot.lane.b32.xlu1 %v1011_v58, %s1531_s24 }
 0x2ec   : > { %1054 = vrot.lane.b32.xlu0 %v1015_v59, %s1531_s24 }
 0x2ef   : > { %1056 = vrot.lane.b32.xlu1 %v1019_v60, %s1531_s24 }
 0x2f0   : > { %1058 = vrot.lane.b32.xlu0 %v1023_v61, %s1531_s24 }
 0x2f3   : > { %1109 = vrot.lane.b32.xlu1 %v995_v56, %s1530_s23 }
 0x2f4   : > { %1111 = vrot.lane.b32.xlu0 %v999_v63, %s1530_s23 }
 0x2f7   : > { %1117 = vrot.lane.b32.xlu1 %v1011_v58, %s1530_s23 }
 0x2f8   : > { %1119 = vrot.lane.b32.xlu0 %v1015_v59, %s1530_s23 }
 0x2fb   : > { %1121 = vrot.lane.b32.xlu1 %v1019_v60, %s1530_s23 }
 0x2fc   : > { %1123 = vrot.lane.b32.xlu0 %v1023_v61, %s1530_s23 }
 0x2ff   : > { %1173 = vrot.lane.b32.xlu1 %v995_v56, %s1539_s11 }
 0x300   : > { %1175 = vrot.lane.b32.xlu0 %v999_v63, %s1539_s11 }
 0x303   : > { %1181 = vrot.lane.b32.xlu1 %v1011_v58, %s1539_s11 }
 0x304   : > { %1183 = vrot.lane.b32.xlu0 %v1015_v59, %s1539_s11 }
 0x307   : > { %1185 = vrot.lane.b32.xlu1 %v1019_v60, %s1539_s11 }
 0x308   : > { %1187 = vrot.lane.b32.xlu0 %v1023_v61, %s1539_s11 }
 0x30b   : > { %1237 = vrot.lane.b32.xlu1 %v995_v56, %s1540_s12 }
 0x30c   : > { %1239 = vrot.lane.b32.xlu0 %v999_v63, %s1540_s12 }
 0x30f   : > { %1245 = vrot.lane.b32.xlu1 %v1011_v58, %s1540_s12 }
 0x310   : > { %1247 = vrot.lane.b32.xlu0 %v1015_v59, %s1540_s12 }
 0x313   : > { %1249 = vrot.lane.b32.xlu1 %v1019_v60, %s1540_s12 }
 0x314   : > { %1251 = vrot.lane.b32.xlu0 %v1023_v61, %s1540_s12 }
 0x317   : > { %1060 = vrot.lane.b32.xlu1 %v1765_v62, %s1531_s24 }
 0x318   : > { %1062 = vrot.lane.b32.xlu0 %v1768_v2, %s1531_s24 }
 0x319   : > { %v1033_v3 = vpop.permute.xlu1 %1032 }
 0x31a   : > { %1081 = vst.msk [vmem:[%s1826_s18] sm:$0x1] %vm1080_vm4, %v1033_v3  ;;  %v1035_v4 = vpop.permute.xlu0 %1034 }
 0x31b   : > { %1082 = vst.msk [vmem:[%s1826_s18 + $0x4] sm:$0x1] %vm1080_vm4, %v1035_v4  ;;  %1125 = vrot.lane.b32.xlu1 %v1765_v62, %s1530_s23 }
 0x31c   : > { %1127 = vrot.lane.b32.xlu0 %v1768_v2, %s1530_s23 }
 0x31d   : > { %v1098_v5 = vpop.permute.xlu1 %1097 }
 0x31e   : > { %1145 = vst.msk [vmem:[%s1826_s18 + $0x1] sm:$0x1] %vm1080_vm4, %v1098_v5  ;;  %v1100_v6 = vpop.permute.xlu0 %1099 }
 0x31f   : > { %1146 = vst.msk [vmem:[%s1826_s18 + $0x5] sm:$0x1] %vm1080_vm4, %v1100_v6  ;;  %1189 = vrot.lane.b32.xlu1 %v1765_v62, %s1539_s11 }
 0x320   : > { %1191 = vrot.lane.b32.xlu0 %v1768_v2, %s1539_s11 }
 0x321   : > { %v1162_v7 = vpop.permute.xlu1 %1161 }
 0x322   : > { %1209 = vst.msk [vmem:[%s1826_s18 + $0x2] sm:$0x1] %vm1080_vm4, %v1162_v7  ;;  %v1164_v8 = vpop.permute.xlu0 %1163 }
 0x323   : > { %1210 = vst.msk [vmem:[%s1826_s18 + $0x6] sm:$0x1] %vm1080_vm4, %v1164_v8  ;;  %1253 = vrot.lane.b32.xlu1 %v1765_v62, %s1540_s12 }
 0x324   : > { %1255 = vrot.lane.b32.xlu0 %v1768_v2, %s1540_s12 }
 0x325   : > { %v1226_v9 = vpop.permute.xlu1 %1225 }
 0x326   : > { %1273 = vst.msk [vmem:[%s1826_s18 + $0x3] sm:$0x1] %vm1080_vm4, %v1226_v9  ;;  %v1228_v10 = vpop.permute.xlu0 %1227 }
 0x327   : > { %1274 = vst.msk [vmem:[%s1826_s18 + $0x7] sm:$0x1] %vm1080_vm4, %v1228_v10 }
 0x329   : > { %v1037_v40 = vpop.permute.xlu1 %1036 }
 0x32a   : > { %1083 = vst.msk [vmem:[%s1826_s18 + $0x8] sm:$0x1] %vm1080_vm4, %v1037_v40  ;;  %v1039_v11 = vpop.permute.xlu0 %1038 }
 0x32b   : > { %1084 = vst.msk [vmem:[%s1826_s18 + $0xc] sm:$0x1] %vm1080_vm4, %v1039_v11 }
 0x32d   : > { %v1041_v12 = vpop.permute.xlu1 %1040 }
 0x32e   : > { %1085 = vst.msk [vmem:[%s1826_s18 + $0x10] sm:$0x1] %vm1080_vm4, %v1041_v12  ;;  %v1043_v45 = vpop.permute.xlu0 %1042 }
 0x32f   : > { %1086 = vst.msk [vmem:[%s1826_s18 + $0x14] sm:$0x1] %vm1080_vm4, %v1043_v45 }
 0x331   : > { %v1049_v13 = vpop.permute.xlu1 %1048 }
 0x332   : > { %1089 = vst.msk [vmem:[%s1826_s18 + $0x20] sm:$0x1] %vm1080_vm4, %v1049_v13  ;;  %v1051_v43 = vpop.permute.xlu0 %1050 }
 0x333   : > { %1090 = vst.msk [vmem:[%s1826_s18 + $0x24] sm:$0x1] %vm1080_vm4, %v1051_v43 }
 0x335   : > { %v1102_v14 = vpop.permute.xlu1 %1101 }
 0x336   : > { %1147 = vst.msk [vmem:[%s1826_s18 + $0x9] sm:$0x1] %vm1080_vm4, %v1102_v14  ;;  %v1104_v15 = vpop.permute.xlu0 %1103 }
 0x337   : > { %1148 = vst.msk [vmem:[%s1826_s18 + $0xd] sm:$0x1] %vm1080_vm4, %v1104_v15 }
 0x339   : > { %v1106_v50 = vpop.permute.xlu1 %1105 }
 0x33a   : > { %1149 = vst.msk [vmem:[%s1826_s18 + $0x11] sm:$0x1] %vm1080_vm4, %v1106_v50  ;;  %v1108_v16 = vpop.permute.xlu0 %1107 }
 0x33b   : > { %1150 = vst.msk [vmem:[%s1826_s18 + $0x15] sm:$0x1] %vm1080_vm4, %v1108_v16 }
 0x33d   : > { %v1114_v17 = vpop.permute.xlu1 %1113 }
 0x33e   : > { %1153 = vst.msk [vmem:[%s1826_s18 + $0x21] sm:$0x1] %vm1080_vm4, %v1114_v17  ;;  %v1116_v18 = vpop.permute.xlu0 %1115 }
 0x33f   : > { %1154 = vst.msk [vmem:[%s1826_s18 + $0x25] sm:$0x1] %vm1080_vm4, %v1116_v18 }
 0x341   : > { %v1166_v19 = vpop.permute.xlu1 %1165 }
 0x342   : > { %1211 = vst.msk [vmem:[%s1826_s18 + $0xa] sm:$0x1] %vm1080_vm4, %v1166_v19  ;;  %v1168_v20 = vpop.permute.xlu0 %1167 }
 0x343   : > { %1212 = vst.msk [vmem:[%s1826_s18 + $0xe] sm:$0x1] %vm1080_vm4, %v1168_v20 }
 0x345   : > { %v1170_v21 = vpop.permute.xlu1 %1169 }
 0x346   : > { %1213 = vst.msk [vmem:[%s1826_s18 + $0x12] sm:$0x1] %vm1080_vm4, %v1170_v21  ;;  %v1172_v22 = vpop.permute.xlu0 %1171 }
 0x347   : > { %1214 = vst.msk [vmem:[%s1826_s18 + $0x16] sm:$0x1] %vm1080_vm4, %v1172_v22 }
 0x349   : > { %v1178_v23 = vpop.permute.xlu1 %1177 }
 0x34a   : > { %1217 = vst.msk [vmem:[%s1826_s18 + $0x22] sm:$0x1] %vm1080_vm4, %v1178_v23  ;;  %v1180_v24 = vpop.permute.xlu0 %1179 }
 0x34b   : > { %1218 = vst.msk [vmem:[%s1826_s18 + $0x26] sm:$0x1] %vm1080_vm4, %v1180_v24 }
 0x34d   : > { %v1230_v25 = vpop.permute.xlu1 %1229 }
 0x34e   : > { %1275 = vst.msk [vmem:[%s1826_s18 + $0xb] sm:$0x1] %vm1080_vm4, %v1230_v25  ;;  %v1232_v26 = vpop.permute.xlu0 %1231 }
 0x34f   : > { %1276 = vst.msk [vmem:[%s1826_s18 + $0xf] sm:$0x1] %vm1080_vm4, %v1232_v26 }
 0x351   : > { %v1234_v27 = vpop.permute.xlu1 %1233 }
 0x352   : > { %1277 = vst.msk [vmem:[%s1826_s18 + $0x13] sm:$0x1] %vm1080_vm4, %v1234_v27  ;;  %v1236_v28 = vpop.permute.xlu0 %1235 }
 0x353   : > { %1278 = vst.msk [vmem:[%s1826_s18 + $0x17] sm:$0x1] %vm1080_vm4, %v1236_v28 }
 0x355   : > { %v1242_v29 = vpop.permute.xlu1 %1241 }
 0x356   : > { %1281 = vst.msk [vmem:[%s1826_s18 + $0x23] sm:$0x1] %vm1080_vm4, %v1242_v29  ;;  %v1244_v0 = vpop.permute.xlu0 %1243 }
 0x357   : > { %1282 = vst.msk [vmem:[%s1826_s18 + $0x27] sm:$0x1] %vm1080_vm4, %v1244_v0 }
 0x359   : > { %v1045_v30 = vpop.permute.xlu1 %1044 }
 0x35a   : > { %1087 = vst.msk [vmem:[%s1826_s18 + $0x18] sm:$0x1] %vm1080_vm4, %v1045_v30  ;;  %v1047_v31 = vpop.permute.xlu0 %1046 }
 0x35b   : > { %1088 = vst.msk [vmem:[%s1826_s18 + $0x1c] sm:$0x1] %vm1080_vm4, %v1047_v31 }
 0x35d   : > { %v1053_v32 = vpop.permute.xlu1 %1052 }
 0x35e   : > { %1091 = vst.msk [vmem:[%s1826_s18 + $0x28] sm:$0x1] %vm1080_vm4, %v1053_v32  ;;  %v1055_v33 = vpop.permute.xlu0 %1054 }
 0x35f   : > { %1092 = vst.msk [vmem:[%s1826_s18 + $0x2c] sm:$0x1] %vm1080_vm4, %v1055_v33 }
 0x361   : > { %v1057_v34 = vpop.permute.xlu1 %1056 }
 0x362   : > { %1093 = vst.msk [vmem:[%s1826_s18 + $0x30] sm:$0x1] %vm1080_vm4, %v1057_v34  ;;  %v1059_v35 = vpop.permute.xlu0 %1058 }
 0x363   : > { %1094 = vst.msk [vmem:[%s1826_s18 + $0x34] sm:$0x1] %vm1080_vm4, %v1059_v35 }
 0x365   : > { %v1110_v36 = vpop.permute.xlu1 %1109 }
 0x366   : > { %1151 = vst.msk [vmem:[%s1826_s18 + $0x19] sm:$0x1] %vm1080_vm4, %v1110_v36  ;;  %v1112_v37 = vpop.permute.xlu0 %1111 }
 0x367   : > { %1152 = vst.msk [vmem:[%s1826_s18 + $0x1d] sm:$0x1] %vm1080_vm4, %v1112_v37 }
 0x369   : > { %v1118_v38 = vpop.permute.xlu1 %1117 }
 0x36a   : > { %1155 = vst.msk [vmem:[%s1826_s18 + $0x29] sm:$0x1] %vm1080_vm4, %v1118_v38  ;;  %v1120_v39 = vpop.permute.xlu0 %1119 }
 0x36b   : > { %1156 = vst.msk [vmem:[%s1826_s18 + $0x2d] sm:$0x1] %vm1080_vm4, %v1120_v39 }
 0x36d   : > { %v1122_v41 = vpop.permute.xlu1 %1121 }
 0x36e   : > { %1157 = vst.msk [vmem:[%s1826_s18 + $0x31] sm:$0x1] %vm1080_vm4, %v1122_v41  ;;  %v1124_v42 = vpop.permute.xlu0 %1123 }
 0x36f   : > { %1158 = vst.msk [vmem:[%s1826_s18 + $0x35] sm:$0x1] %vm1080_vm4, %v1124_v42 }
 0x371   : > { %v1174_v44 = vpop.permute.xlu1 %1173 }
 0x372   : > { %1215 = vst.msk [vmem:[%s1826_s18 + $0x1a] sm:$0x1] %vm1080_vm4, %v1174_v44  ;;  %v1176_v46 = vpop.permute.xlu0 %1175 }
 0x373   : > { %1216 = vst.msk [vmem:[%s1826_s18 + $0x1e] sm:$0x1] %vm1080_vm4, %v1176_v46 }
 0x375   : > { %v1182_v47 = vpop.permute.xlu1 %1181 }
 0x376   : > { %1219 = vst.msk [vmem:[%s1826_s18 + $0x2a] sm:$0x1] %vm1080_vm4, %v1182_v47  ;;  %v1184_v48 = vpop.permute.xlu0 %1183 }
 0x377   : > { %1220 = vst.msk [vmem:[%s1826_s18 + $0x2e] sm:$0x1] %vm1080_vm4, %v1184_v48 }
 0x379   : > { %v1186_v49 = vpop.permute.xlu1 %1185 }
 0x37a   : > { %1221 = vst.msk [vmem:[%s1826_s18 + $0x32] sm:$0x1] %vm1080_vm4, %v1186_v49  ;;  %v1188_v51 = vpop.permute.xlu0 %1187 }
 0x37b   : > { %1222 = vst.msk [vmem:[%s1826_s18 + $0x36] sm:$0x1] %vm1080_vm4, %v1188_v51 }
 0x37d   : > { %v1238_v52 = vpop.permute.xlu1 %1237 }
 0x37e   : > { %1279 = vst.msk [vmem:[%s1826_s18 + $0x1b] sm:$0x1] %vm1080_vm4, %v1238_v52  ;;  %v1240_v53 = vpop.permute.xlu0 %1239 }
 0x37f   : > { %1280 = vst.msk [vmem:[%s1826_s18 + $0x1f] sm:$0x1] %vm1080_vm4, %v1240_v53 }
 0x381   : > { %v1246_v54 = vpop.permute.xlu1 %1245 }
 0x382   : > { %1283 = vst.msk [vmem:[%s1826_s18 + $0x2b] sm:$0x1] %vm1080_vm4, %v1246_v54  ;;  %v1248_v55 = vpop.permute.xlu0 %1247 }
 0x383   : > { %1284 = vst.msk [vmem:[%s1826_s18 + $0x2f] sm:$0x1] %vm1080_vm4, %v1248_v55 }
 0x385   : > { %v1250_v56 = vpop.permute.xlu1 %1249 }
 0x386   : > { %1285 = vst.msk [vmem:[%s1826_s18 + $0x33] sm:$0x1] %vm1080_vm4, %v1250_v56  ;;  %v1252_v57 = vpop.permute.xlu0 %1251 }
 0x387   : > { %1286 = vst.msk [vmem:[%s1826_s18 + $0x37] sm:$0x1] %vm1080_vm4, %v1252_v57 }
 0x389   : > { %v1061_v58 = vpop.permute.xlu1 %1060 }
 0x38a   : > { %1095 = vst.msk [vmem:[%s1826_s18 + $0x38] sm:$0x1] %vm1080_vm4, %v1061_v58  ;;  %v1063_v59 = vpop.permute.xlu0 %1062 }
 0x38b   : > { %1096 = vst.msk [vmem:[%s1826_s18 + $0x3c] sm:$0x1] %vm1080_vm4, %v1063_v59 }
 0x38d   : > { %v1126_v60 = vpop.permute.xlu1 %1125 }
 0x38e   : > { %1159 = vst.msk [vmem:[%s1826_s18 + $0x39] sm:$0x1] %vm1080_vm4, %v1126_v60  ;;  %v1128_v61 = vpop.permute.xlu0 %1127 }
 0x38f   : > { %1160 = vst.msk [vmem:[%s1826_s18 + $0x3d] sm:$0x1] %vm1080_vm4, %v1128_v61 }
 0x391   : > { %v1190_v62 = vpop.permute.xlu1 %1189 }
 0x392   : > { %1223 = vst.msk [vmem:[%s1826_s18 + $0x3a] sm:$0x1] %vm1080_vm4, %v1190_v62  ;;  %v1192_v63 = vpop.permute.xlu0 %1191 }
 0x393   : > { %1224 = vst.msk [vmem:[%s1826_s18 + $0x3e] sm:$0x1] %vm1080_vm4, %v1192_v63 }
 0x395   : > { %v1254_v1 = vpop.permute.xlu1 %1253 }
 0x396   : > { %1287 = vst.msk [vmem:[%s1826_s18 + $0x3b] sm:$0x1] %vm1080_vm4, %v1254_v1  ;;  %v1256_v2 = vpop.permute.xlu0 %1255 }
 0x397   : > { %1288 = vst.msk [vmem:[%s1826_s18 + $0x3f] sm:$0x1] %vm1080_vm4, %v1256_v2 }
 0x398 PF: > { %s14_s15 = sadd.s32 1, %s1525_s15  }
 0x399   : > { %p11_p4 = scmp.ge.s32.totalorder %s14_s15, 4  }
 0x39b   :  { %13 = sbr.rel (!%p11_p4) target bundleno = 1 (0x1), region = 66 }

</bundles_post_ra>
